<compile_context>
chip_gen: v7x
topology: tpu7x:2x2x1
jax: 0.10.0
libtpu: 0.0.40
codegen_flags: <defaults>
</compile_context>

<pallas_src>
import jax
import jax.numpy as jnp
from jax.experimental import pallas as pl
from jax.experimental.pallas import tpu as pltpu

_LANES = 128


def _cdiv(a, b):
    return -(-a // b)


def _round_up(a, b):
    return _cdiv(a, b) * b


# ---------------------------------------------------------------------------
# Path 1: node tables resident in VMEM, gather done in-kernel (one-hot matmul).
# ---------------------------------------------------------------------------
def _u_dot_v_resident_kernel(src_ref, dst_ref, ut_ref, vt_ref, o_ref):
    # src_ref, dst_ref : (rows, W) int32   lane-flat edge endpoint ids
    # ut_ref           : (D, n_gene)       gene features, transposed (VMEM resident)
    # vt_ref           : (D, n_cell)       cell features, transposed (VMEM resident)
    # o_ref            : (rows, W)         per-edge <u, v>, same edge order as ids
    rows = o_ref.shape[0]
    n_gene = ut_ref.shape[1]
    n_cell = vt_ref.shape[1]

    ut = ut_ref[...]                       # small tables, loaded from VMEM
    vt = vt_ref[...]
    feat_dtype = ut.dtype
    gene_iota = jax.lax.broadcasted_iota(jnp.int32, (n_gene, 1), 0)
    cell_iota = jax.lax.broadcasted_iota(jnp.int32, (n_cell, 1), 0)

    # Static unroll over block rows: each row is a lane-flat chunk of W edges,
    # which bounds the (n_nodes, W) one-hot intermediates instead of
    # materialising them for the whole tile.
    for r in range(rows):
        src_row = src_ref[r:r + 1, :]                        # (1, W) edges on lanes
        dst_row = dst_ref[r:r + 1, :]
        oh_u = (src_row == gene_iota).astype(feat_dtype)     # (n_gene, W) exact 0/1
        oh_v = (dst_row == cell_iota).astype(feat_dtype)     # (n_cell, W)
        # Exact row gather on the MXU: each one-hot column selects one table row.
        u = jnp.dot(ut, oh_u, preferred_element_type=jnp.float32)   # (D, W)
        v = jnp.dot(vt, oh_v, preferred_element_type=jnp.float32)   # (D, W)
        s = jnp.sum(u * v, axis=0, keepdims=True)                   # (1, W) f32 acc
        o_ref[r:r + 1, :] = s.astype(o_ref.dtype)


def _decode_resident(ufeat, ifeat, src_ids, dst_ids, te, n_tiles, rows):
    E = int(src_ids.shape[0])
    n_gene, D = int(ufeat.shape[0]), int(ufeat.shape[1])
    n_cell = int(ifeat.shape[0])
    out_dtype = ufeat.dtype
    E_pad = te * n_tiles
    W = te // rows

    pad = E_pad - E
    src2 = jnp.pad(src_ids, (0, pad)).reshape(n_tiles * rows, W)
    dst2 = jnp.pad(dst_ids, (0, pad)).reshape(n_tiles * rows, W)
    ut = ufeat.T                                   # (D, n_gene), tiny XLA transpose
    vt = ifeat.T                                   # (D, n_cell)

    fsz = jnp.dtype(ufeat.dtype).itemsize
    osz = jnp.dtype(out_dtype).itemsize
    # Real (lane-padded, double-buffered) footprint + intermediate slack.
    tables = 2 * 2 * _round_up(D, 8) * _round_up(max(n_gene, n_cell), _LANES) * fsz
    id_blocks = 2 * 2 * rows * W * 4
    out_block = 2 * rows * W * osz
    inter = 2 * (2 * _round_up(max(n_gene, n_cell), 8) * W * fsz
                 + 4 * _round_up(D, 8) * W * 4)
    vmem_needed = tables + id_blocks + out_block + inter + (4 << 20)
    vmem_limit = int(min(40 << 20, max(32 << 20, vmem_needed)))

    out = pl.pallas_call(
        _u_dot_v_resident_kernel,
        out_shape=jax.ShapeDtypeStruct((n_tiles * rows, W), out_dtype),
        grid_spec=pltpu.PrefetchScalarGridSpec(
            num_scalar_prefetch=0,
            grid=(n_tiles,),
            in_specs=[
                pl.BlockSpec((rows, W), lambda i: (i, 0)),
                pl.BlockSpec((rows, W), lambda i: (i, 0)),
                pl.BlockSpec((D, n_gene), lambda i: (0, 0)),   # resident table
                pl.BlockSpec((D, n_cell), lambda i: (0, 0)),   # resident table
            ],
            out_specs=pl.BlockSpec((rows, W), lambda i: (i, 0)),
        ),
        compiler_params=pltpu.CompilerParams(
            dimension_semantics=("parallel",),
            vmem_limit_bytes=vmem_limit,
        ),
    )(src2, dst2, ut, vt)

    # Row-major order of (n_tiles*rows, W) == edge order; drop padding.
    return out.reshape(E_pad, 1)[:E]


# ---------------------------------------------------------------------------
# Path 2 (large node tables): gather outside, fused into the kernel inputs.
# ---------------------------------------------------------------------------
def _u_dot_v_gathered_kernel(u_ref, v_ref, o_ref):
    # u_ref, v_ref: (te, D) gathered per-edge features; o_ref: (te//128, 128).
    g = o_ref.shape[0]
    u = u_ref[...].astype(jnp.float32).reshape(g, _LANES, -1)
    v = v_ref[...].astype(jnp.float32).reshape(g, _LANES, -1)
    o_ref[...] = jnp.sum(u * v, axis=-1).astype(o_ref.dtype)


def _decode_gathered(ufeat, ifeat, src_ids, dst_ids, te, rows):
    E = int(src_ids.shape[0])
    D = int(ufeat.shape[1])
    out_dtype = ufeat.dtype
    fsz = jnp.dtype(ufeat.dtype).itemsize
    osz = jnp.dtype(out_dtype).itemsize
    gran = rows * _LANES

    def footprint(t):
        # 2 inputs x 2 buffers x lane-padded (t, D) block + double-buffered output.
        return 2 * 2 * t * _round_up(D, _LANES) * fsz + 2 * t * osz + (4 << 20)

    while footprint(te) > (40 << 20) and te > gran:
        te = max(gran, _round_up(te // 2, gran))
    n_tiles = _cdiv(E, te)
    E_pad = n_tiles * te

    pad = E_pad - E
    src_p = jnp.pad(src_ids, (0, pad))
    dst_p = jnp.pad(dst_ids, (0, pad))
    u_e = jnp.take(ufeat, src_p, axis=0)       # may fuse into the pallas_call input
    v_e = jnp.take(ifeat, dst_p, axis=0)

    vmem_limit = int(min(40 << 20, max(32 << 20, footprint(te))))
    out = pl.pallas_call(
        _u_dot_v_gathered_kernel,
        out_shape=jax.ShapeDtypeStruct((E_pad // _LANES, _LANES), out_dtype),
        grid_spec=pltpu.PrefetchScalarGridSpec(
            num_scalar_prefetch=0,
            grid=(n_tiles,),
            in_specs=[
                pl.BlockSpec((te, D), lambda i: (i, 0)),
                pl.BlockSpec((te, D), lambda i: (i, 0)),
            ],
            out_specs=pl.BlockSpec((te // _LANES, _LANES), lambda i: (i, 0)),
        ),
        compiler_params=pltpu.CompilerParams(
            dimension_semantics=("parallel",),
            vmem_limit_bytes=vmem_limit,
            allow_input_fusion=[True, True],
        ),
    )(u_e, v_e)
    return out.reshape(E_pad, 1)[:E]


# ---------------------------------------------------------------------------
# Public wrapper == Decoder.forward
# ---------------------------------------------------------------------------
def decoder_forward(ufeat, ifeat, src_ids, dst_ids, *, edge_tile=4096):
    """Pallas implementation of Decoder.forward (u_dot_v over bipartite edges).

    ufeat:   [n_gene, D] gene node features
    ifeat:   [n_cell, D] cell node features
    src_ids: [E] int     gene index per edge
    dst_ids: [E] int     cell index per edge
    returns: [E, 1]      per-edge u.v  (graph.edata['sr'])
    """
    # Dropout with rate 0.0 is the identity; Decoder has no learnable params.
    E = int(src_ids.shape[0])
    D = int(ufeat.shape[1])
    n_gene = int(ufeat.shape[0])
    n_cell = int(ifeat.shape[0])
    out_dtype = ufeat.dtype
    osz = jnp.dtype(out_dtype).itemsize
    fsz = jnp.dtype(ufeat.dtype).itemsize

    src_ids = src_ids.astype(jnp.int32)
    dst_ids = dst_ids.astype(jnp.int32)

    # --- edge tiling: minimal padding, >=2 tiles so v7x megacore can share ---
    rows = 16 if osz < 4 else 8            # dense output stores need 8 (f32) / 16 (bf16) sublanes
    gran = rows * _LANES                   # 1024 / 2048 edge granularity
    cap = max(gran, (int(edge_tile) // gran) * gran)
    n_tiles = max(1, _cdiv(E, cap))
    if n_tiles == 1 and E > gran:
        n_tiles = 2
    te = _round_up(_cdiv(E, n_tiles), gran)
    n_tiles = _cdiv(E, te)

    # --- path selection ------------------------------------------------------
    table_vmem = 2 * 2 * _round_up(D, 8) * _round_up(max(n_gene, n_cell), _LANES) * fsz
    resident_ok = max(n_gene, n_cell) <= 1024 and table_vmem <= (8 << 20)
    if resident_ok:
        return _decode_resident(ufeat, ifeat, src_ids, dst_ids, te, n_tiles, rows)
    # TODO(synk): a true in-kernel dynamic row gather (per-edge DMA from an
    # HBM-resident node table) is not implemented; for large tables we keep the
    # XLA gather and rely on allow_input_fusion to fuse it into the kernel inputs.
    return _decode_gathered(ufeat, ifeat, src_ids, dst_ids, te, rows)


if __name__ == "__main__":
    key = jax.random.PRNGKey(0)
    k_u, k_i, k_s, k_d = jax.random.split(key, 4)

    # Small shapes: modest node tables, enough edges for a multi-tile grid
    # plus a ragged (padded) tail.
    n_gene, n_cell, D, E = 96, 80, 32, 2500

    # Decoder itself has no learnable parameters, so only node features are needed.
    ufeat = jax.random.normal(k_u, (n_gene, D), dtype=jnp.float32)
    ifeat = jax.random.normal(k_i, (n_cell, D), dtype=jnp.float32)

    # Deterministic synthetic bipartite edge list (gene -> cell).
    src_ids = jax.random.randint(k_s, (E,), 0, n_gene, dtype=jnp.int32)
    dst_ids = jax.random.randint(k_d, (E,), 0, n_cell, dtype=jnp.int32)

    sr = decoder_forward(ufeat, ifeat, src_ids, dst_ids)
    sr = jax.block_until_ready(sr)

    # Pure-JAX reference for u_dot_v.
    ref = jnp.sum(ufeat[src_ids] * ifeat[dst_ids], axis=-1, keepdims=True)
    assert sr.shape == (E, 1), sr.shape
    assert jnp.allclose(sr, ref, atol=1e-4, rtol=1e-4), float(jnp.max(jnp.abs(sr - ref)))

    print("KERNEL_OK")
</pallas_src>

<mosaic_0001>
module attributes {stable_mosaic.version = 11 : i64} {
  func.func @_u_dot_v_resident_kernel(%arg0: i32, %arg1: memref<8x256xi32, #tpu.memory_space<vmem>>, %arg2: memref<8x256xi32, #tpu.memory_space<vmem>>, %arg3: memref<32x96xf32, #tpu.memory_space<vmem>>, %arg4: memref<32x80xf32, #tpu.memory_space<vmem>>, %arg5: memref<8x256xf32, #tpu.memory_space<vmem>>) attributes {dimension_semantics = [#tpu.dimension_semantics<parallel>], iteration_bounds = array<i64: 2>, scalar_prefetch = 0 : i64, scratch_operands = 0 : i64, tpu.core_type = #tpu.core_type<tc>, window_params = [{transform_indices = @transform_0, window_bounds = array<i64: 8, 256>}, {transform_indices = @transform_1, window_bounds = array<i64: 8, 256>}, {pipeline_mode = #tpu.pipeline_mode<synchronous>, transform_indices = @transform_2, window_bounds = array<i64: 32, 96>}, {pipeline_mode = #tpu.pipeline_mode<synchronous>, transform_indices = @transform_3, window_bounds = array<i64: 32, 80>}, {transform_indices = @transform_4, window_bounds = array<i64: 8, 256>}]} {
    %c0 = arith.constant 0 : index
    %c0_0 = arith.constant 0 : index
    %0 = vector.load %arg3[%c0, %c0_0] : memref<32x96xf32, #tpu.memory_space<vmem>>, vector<32x96xf32>
    %c0_1 = arith.constant 0 : index
    %c0_2 = arith.constant 0 : index
    %1 = vector.load %arg4[%c0_1, %c0_2] : memref<32x80xf32, #tpu.memory_space<vmem>>, vector<32x80xf32>
    %2 = tpu.iota {dimensions = array<i32: 0>} : vector<96x1xi32>
    %3 = tpu.iota {dimensions = array<i32: 0>} : vector<80x1xi32>
    %c0_3 = arith.constant 0 : index
    %c0_4 = arith.constant 0 : index
    %4 = vector.load %arg1[%c0_3, %c0_4] : memref<8x256xi32, #tpu.memory_space<vmem>>, vector<1x256xi32>
    %c0_5 = arith.constant 0 : index
    %c0_6 = arith.constant 0 : index
    %5 = vector.load %arg2[%c0_5, %c0_6] : memref<8x256xi32, #tpu.memory_space<vmem>>, vector<1x256xi32>
    %6 = vector.broadcast %4 : vector<1x256xi32> to vector<96x256xi32>
    %7 = vector.broadcast %2 : vector<96x1xi32> to vector<96x256xi32>
    %8 = arith.cmpi eq, %6, %7 : vector<96x256xi32>
    %9 = arith.extui %8 : vector<96x256xi1> to vector<96x256xi32>
    %10 = arith.sitofp %9 : vector<96x256xi32> to vector<96x256xf32>
    %11 = vector.broadcast %5 : vector<1x256xi32> to vector<80x256xi32>
    %12 = vector.broadcast %3 : vector<80x1xi32> to vector<80x256xi32>
    %13 = arith.cmpi eq, %11, %12 : vector<80x256xi32>
    %14 = arith.extui %13 : vector<80x256xi1> to vector<80x256xi32>
    %15 = arith.sitofp %14 : vector<80x256xi32> to vector<80x256xf32>
    %cst = arith.constant dense<0.000000e+00> : vector<32x256xf32>
    %16 = tpu.matmul %0, %10, %cst {dimension_numbers = #tpu.dot_dimension_numbers<[1], [0], [0], [1], [0, 0, 1, 1], [], []>} : vector<32x96xf32>, vector<96x256xf32>, vector<32x256xf32> -> vector<32x256xf32>
    %cst_7 = arith.constant dense<0.000000e+00> : vector<32x256xf32>
    %17 = tpu.matmul %1, %15, %cst_7 {dimension_numbers = #tpu.dot_dimension_numbers<[1], [0], [0], [1], [0, 0, 1, 1], [], []>} : vector<32x80xf32>, vector<80x256xf32>, vector<32x256xf32> -> vector<32x256xf32>
    %18 = arith.mulf %16, %17 : vector<32x256xf32>
    %cst_8 = arith.constant dense<0.000000e+00> : vector<256xf32>
    %19 = vector.multi_reduction <add>, %18, %cst_8 [0] : vector<32x256xf32> to vector<256xf32>
    %20 = vector.shape_cast %19 : vector<256xf32> to vector<1x256xf32>
    %c0_9 = arith.constant 0 : index
    %c0_10 = arith.constant 0 : index
    %21 = vector.load %arg5[%c0_9, %c0_10] : memref<8x256xf32, #tpu.memory_space<vmem>>, vector<1x256xf32>
    tpu.vector_store %arg5[%c0_9, %c0_10], %20 {strides = array<i32>} : memref<8x256xf32, #tpu.memory_space<vmem>>, vector<1x256xf32>,
    %c1 = arith.constant 1 : index
    %c0_11 = arith.constant 0 : index
    %22 = vector.load %arg1[%c1, %c0_11] : memref<8x256xi32, #tpu.memory_space<vmem>>, vector<1x256xi32>
    %c1_12 = arith.constant 1 : index
    %c0_13 = arith.constant 0 : index
    %23 = vector.load %arg2[%c1_12, %c0_13] : memref<8x256xi32, #tpu.memory_space<vmem>>, vector<1x256xi32>
    %24 = vector.broadcast %22 : vector<1x256xi32> to vector<96x256xi32>
    %25 = vector.broadcast %2 : vector<96x1xi32> to vector<96x256xi32>
    %26 = arith.cmpi eq, %24, %25 : vector<96x256xi32>
    %27 = arith.extui %26 : vector<96x256xi1> to vector<96x256xi32>
    %28 = arith.sitofp %27 : vector<96x256xi32> to vector<96x256xf32>
    %29 = vector.broadcast %23 : vector<1x256xi32> to vector<80x256xi32>
    %30 = vector.broadcast %3 : vector<80x1xi32> to vector<80x256xi32>
    %31 = arith.cmpi eq, %29, %30 : vector<80x256xi32>
    %32 = arith.extui %31 : vector<80x256xi1> to vector<80x256xi32>
    %33 = arith.sitofp %32 : vector<80x256xi32> to vector<80x256xf32>
    %cst_14 = arith.constant dense<0.000000e+00> : vector<32x256xf32>
    %34 = tpu.matmul %0, %28, %cst_14 {dimension_numbers = #tpu.dot_dimension_numbers<[1], [0], [0], [1], [0, 0, 1, 1], [], []>} : vector<32x96xf32>, vector<96x256xf32>, vector<32x256xf32> -> vector<32x256xf32>
    %cst_15 = arith.constant dense<0.000000e+00> : vector<32x256xf32>
    %35 = tpu.matmul %1, %33, %cst_15 {dimension_numbers = #tpu.dot_dimension_numbers<[1], [0], [0], [1], [0, 0, 1, 1], [], []>} : vector<32x80xf32>, vector<80x256xf32>, vector<32x256xf32> -> vector<32x256xf32>
    %36 = arith.mulf %34, %35 : vector<32x256xf32>
    %cst_16 = arith.constant dense<0.000000e+00> : vector<256xf32>
    %37 = vector.multi_reduction <add>, %36, %cst_16 [0] : vector<32x256xf32> to vector<256xf32>
    %38 = vector.shape_cast %37 : vector<256xf32> to vector<1x256xf32>
    %c1_17 = arith.constant 1 : index
    %c0_18 = arith.constant 0 : index
    %39 = vector.load %arg5[%c1_17, %c0_18] : memref<8x256xf32, #tpu.memory_space<vmem>>, vector<1x256xf32>
    tpu.vector_store %arg5[%c1_17, %c0_18], %38 {strides = array<i32>} : memref<8x256xf32, #tpu.memory_space<vmem>>, vector<1x256xf32>,
    %c2 = arith.constant 2 : index
    %c0_19 = arith.constant 0 : index
    %40 = vector.load %arg1[%c2, %c0_19] : memref<8x256xi32, #tpu.memory_space<vmem>>, vector<1x256xi32>
    %c2_20 = arith.constant 2 : index
    %c0_21 = arith.constant 0 : index
    %41 = vector.load %arg2[%c2_20, %c0_21] : memref<8x256xi32, #tpu.memory_space<vmem>>, vector<1x256xi32>
    %42 = vector.broadcast %40 : vector<1x256xi32> to vector<96x256xi32>
    %43 = vector.broadcast %2 : vector<96x1xi32> to vector<96x256xi32>
    %44 = arith.cmpi eq, %42, %43 : vector<96x256xi32>
    %45 = arith.extui %44 : vector<96x256xi1> to vector<96x256xi32>
    %46 = arith.sitofp %45 : vector<96x256xi32> to vector<96x256xf32>
    %47 = vector.broadcast %41 : vector<1x256xi32> to vector<80x256xi32>
    %48 = vector.broadcast %3 : vector<80x1xi32> to vector<80x256xi32>
    %49 = arith.cmpi eq, %47, %48 : vector<80x256xi32>
    %50 = arith.extui %49 : vector<80x256xi1> to vector<80x256xi32>
    %51 = arith.sitofp %50 : vector<80x256xi32> to vector<80x256xf32>
    %cst_22 = arith.constant dense<0.000000e+00> : vector<32x256xf32>
    %52 = tpu.matmul %0, %46, %cst_22 {dimension_numbers = #tpu.dot_dimension_numbers<[1], [0], [0], [1], [0, 0, 1, 1], [], []>} : vector<32x96xf32>, vector<96x256xf32>, vector<32x256xf32> -> vector<32x256xf32>
    %cst_23 = arith.constant dense<0.000000e+00> : vector<32x256xf32>
    %53 = tpu.matmul %1, %51, %cst_23 {dimension_numbers = #tpu.dot_dimension_numbers<[1], [0], [0], [1], [0, 0, 1, 1], [], []>} : vector<32x80xf32>, vector<80x256xf32>, vector<32x256xf32> -> vector<32x256xf32>
    %54 = arith.mulf %52, %53 : vector<32x256xf32>
    %cst_24 = arith.constant dense<0.000000e+00> : vector<256xf32>
    %55 = vector.multi_reduction <add>, %54, %cst_24 [0] : vector<32x256xf32> to vector<256xf32>
    %56 = vector.shape_cast %55 : vector<256xf32> to vector<1x256xf32>
    %c2_25 = arith.constant 2 : index
    %c0_26 = arith.constant 0 : index
    %57 = vector.load %arg5[%c2_25, %c0_26] : memref<8x256xf32, #tpu.memory_space<vmem>>, vector<1x256xf32>
    tpu.vector_store %arg5[%c2_25, %c0_26], %56 {strides = array<i32>} : memref<8x256xf32, #tpu.memory_space<vmem>>, vector<1x256xf32>,
    %c3 = arith.constant 3 : index
    %c0_27 = arith.constant 0 : index
    %58 = vector.load %arg1[%c3, %c0_27] : memref<8x256xi32, #tpu.memory_space<vmem>>, vector<1x256xi32>
    %c3_28 = arith.constant 3 : index
    %c0_29 = arith.constant 0 : index
    %59 = vector.load %arg2[%c3_28, %c0_29] : memref<8x256xi32, #tpu.memory_space<vmem>>, vector<1x256xi32>
    %60 = vector.broadcast %58 : vector<1x256xi32> to vector<96x256xi32>
    %61 = vector.broadcast %2 : vector<96x1xi32> to vector<96x256xi32>
    %62 = arith.cmpi eq, %60, %61 : vector<96x256xi32>
    %63 = arith.extui %62 : vector<96x256xi1> to vector<96x256xi32>
    %64 = arith.sitofp %63 : vector<96x256xi32> to vector<96x256xf32>
    %65 = vector.broadcast %59 : vector<1x256xi32> to vector<80x256xi32>
    %66 = vector.broadcast %3 : vector<80x1xi32> to vector<80x256xi32>
    %67 = arith.cmpi eq, %65, %66 : vector<80x256xi32>
    %68 = arith.extui %67 : vector<80x256xi1> to vector<80x256xi32>
    %69 = arith.sitofp %68 : vector<80x256xi32> to vector<80x256xf32>
    %cst_30 = arith.constant dense<0.000000e+00> : vector<32x256xf32>
    %70 = tpu.matmul %0, %64, %cst_30 {dimension_numbers = #tpu.dot_dimension_numbers<[1], [0], [0], [1], [0, 0, 1, 1], [], []>} : vector<32x96xf32>, vector<96x256xf32>, vector<32x256xf32> -> vector<32x256xf32>
    %cst_31 = arith.constant dense<0.000000e+00> : vector<32x256xf32>
    %71 = tpu.matmul %1, %69, %cst_31 {dimension_numbers = #tpu.dot_dimension_numbers<[1], [0], [0], [1], [0, 0, 1, 1], [], []>} : vector<32x80xf32>, vector<80x256xf32>, vector<32x256xf32> -> vector<32x256xf32>
    %72 = arith.mulf %70, %71 : vector<32x256xf32>
    %cst_32 = arith.constant dense<0.000000e+00> : vector<256xf32>
    %73 = vector.multi_reduction <add>, %72, %cst_32 [0] : vector<32x256xf32> to vector<256xf32>
    %74 = vector.shape_cast %73 : vector<256xf32> to vector<1x256xf32>
    %c3_33 = arith.constant 3 : index
    %c0_34 = arith.constant 0 : index
    %75 = vector.load %arg5[%c3_33, %c0_34] : memref<8x256xf32, #tpu.memory_space<vmem>>, vector<1x256xf32>
    tpu.vector_store %arg5[%c3_33, %c0_34], %74 {strides = array<i32>} : memref<8x256xf32, #tpu.memory_space<vmem>>, vector<1x256xf32>,
    %c4 = arith.constant 4 : index
    %c0_35 = arith.constant 0 : index
    %76 = vector.load %arg1[%c4, %c0_35] : memref<8x256xi32, #tpu.memory_space<vmem>>, vector<1x256xi32>
    %c4_36 = arith.constant 4 : index
    %c0_37 = arith.constant 0 : index
    %77 = vector.load %arg2[%c4_36, %c0_37] : memref<8x256xi32, #tpu.memory_space<vmem>>, vector<1x256xi32>
    %78 = vector.broadcast %76 : vector<1x256xi32> to vector<96x256xi32>
    %79 = vector.broadcast %2 : vector<96x1xi32> to vector<96x256xi32>
    %80 = arith.cmpi eq, %78, %79 : vector<96x256xi32>
    %81 = arith.extui %80 : vector<96x256xi1> to vector<96x256xi32>
    %82 = arith.sitofp %81 : vector<96x256xi32> to vector<96x256xf32>
    %83 = vector.broadcast %77 : vector<1x256xi32> to vector<80x256xi32>
    %84 = vector.broadcast %3 : vector<80x1xi32> to vector<80x256xi32>
    %85 = arith.cmpi eq, %83, %84 : vector<80x256xi32>
    %86 = arith.extui %85 : vector<80x256xi1> to vector<80x256xi32>
    %87 = arith.sitofp %86 : vector<80x256xi32> to vector<80x256xf32>
    %cst_38 = arith.constant dense<0.000000e+00> : vector<32x256xf32>
    %88 = tpu.matmul %0, %82, %cst_38 {dimension_numbers = #tpu.dot_dimension_numbers<[1], [0], [0], [1], [0, 0, 1, 1], [], []>} : vector<32x96xf32>, vector<96x256xf32>, vector<32x256xf32> -> vector<32x256xf32>
    %cst_39 = arith.constant dense<0.000000e+00> : vector<32x256xf32>
    %89 = tpu.matmul %1, %87, %cst_39 {dimension_numbers = #tpu.dot_dimension_numbers<[1], [0], [0], [1], [0, 0, 1, 1], [], []>} : vector<32x80xf32>, vector<80x256xf32>, vector<32x256xf32> -> vector<32x256xf32>
    %90 = arith.mulf %88, %89 : vector<32x256xf32>
    %cst_40 = arith.constant dense<0.000000e+00> : vector<256xf32>
    %91 = vector.multi_reduction <add>, %90, %cst_40 [0] : vector<32x256xf32> to vector<256xf32>
    %92 = vector.shape_cast %91 : vector<256xf32> to vector<1x256xf32>
    %c4_41 = arith.constant 4 : index
    %c0_42 = arith.constant 0 : index
    %93 = vector.load %arg5[%c4_41, %c0_42] : memref<8x256xf32, #tpu.memory_space<vmem>>, vector<1x256xf32>
    tpu.vector_store %arg5[%c4_41, %c0_42], %92 {strides = array<i32>} : memref<8x256xf32, #tpu.memory_space<vmem>>, vector<1x256xf32>,
    %c5 = arith.constant 5 : index
    %c0_43 = arith.constant 0 : index
    %94 = vector.load %arg1[%c5, %c0_43] : memref<8x256xi32, #tpu.memory_space<vmem>>, vector<1x256xi32>
    %c5_44 = arith.constant 5 : index
    %c0_45 = arith.constant 0 : index
    %95 = vector.load %arg2[%c5_44, %c0_45] : memref<8x256xi32, #tpu.memory_space<vmem>>, vector<1x256xi32>
    %96 = vector.broadcast %94 : vector<1x256xi32> to vector<96x256xi32>
    %97 = vector.broadcast %2 : vector<96x1xi32> to vector<96x256xi32>
    %98 = arith.cmpi eq, %96, %97 : vector<96x256xi32>
    %99 = arith.extui %98 : vector<96x256xi1> to vector<96x256xi32>
    %100 = arith.sitofp %99 : vector<96x256xi32> to vector<96x256xf32>
    %101 = vector.broadcast %95 : vector<1x256xi32> to vector<80x256xi32>
    %102 = vector.broadcast %3 : vector<80x1xi32> to vector<80x256xi32>
    %103 = arith.cmpi eq, %101, %102 : vector<80x256xi32>
    %104 = arith.extui %103 : vector<80x256xi1> to vector<80x256xi32>
    %105 = arith.sitofp %104 : vector<80x256xi32> to vector<80x256xf32>
    %cst_46 = arith.constant dense<0.000000e+00> : vector<32x256xf32>
    %106 = tpu.matmul %0, %100, %cst_46 {dimension_numbers = #tpu.dot_dimension_numbers<[1], [0], [0], [1], [0, 0, 1, 1], [], []>} : vector<32x96xf32>, vector<96x256xf32>, vector<32x256xf32> -> vector<32x256xf32>
    %cst_47 = arith.constant dense<0.000000e+00> : vector<32x256xf32>
    %107 = tpu.matmul %1, %105, %cst_47 {dimension_numbers = #tpu.dot_dimension_numbers<[1], [0], [0], [1], [0, 0, 1, 1], [], []>} : vector<32x80xf32>, vector<80x256xf32>, vector<32x256xf32> -> vector<32x256xf32>
    %108 = arith.mulf %106, %107 : vector<32x256xf32>
    %cst_48 = arith.constant dense<0.000000e+00> : vector<256xf32>
    %109 = vector.multi_reduction <add>, %108, %cst_48 [0] : vector<32x256xf32> to vector<256xf32>
    %110 = vector.shape_cast %109 : vector<256xf32> to vector<1x256xf32>
    %c5_49 = arith.constant 5 : index
    %c0_50 = arith.constant 0 : index
    %111 = vector.load %arg5[%c5_49, %c0_50] : memref<8x256xf32, #tpu.memory_space<vmem>>, vector<1x256xf32>
    tpu.vector_store %arg5[%c5_49, %c0_50], %110 {strides = array<i32>} : memref<8x256xf32, #tpu.memory_space<vmem>>, vector<1x256xf32>,
    %c6 = arith.constant 6 : index
    %c0_51 = arith.constant 0 : index
    %112 = vector.load %arg1[%c6, %c0_51] : memref<8x256xi32, #tpu.memory_space<vmem>>, vector<1x256xi32>
    %c6_52 = arith.constant 6 : index
    %c0_53 = arith.constant 0 : index
    %113 = vector.load %arg2[%c6_52, %c0_53] : memref<8x256xi32, #tpu.memory_space<vmem>>, vector<1x256xi32>
    %114 = vector.broadcast %112 : vector<1x256xi32> to vector<96x256xi32>
    %115 = vector.broadcast %2 : vector<96x1xi32> to vector<96x256xi32>
    %116 = arith.cmpi eq, %114, %115 : vector<96x256xi32>
    %117 = arith.extui %116 : vector<96x256xi1> to vector<96x256xi32>
    %118 = arith.sitofp %117 : vector<96x256xi32> to vector<96x256xf32>
    %119 = vector.broadcast %113 : vector<1x256xi32> to vector<80x256xi32>
    %120 = vector.broadcast %3 : vector<80x1xi32> to vector<80x256xi32>
    %121 = arith.cmpi eq, %119, %120 : vector<80x256xi32>
    %122 = arith.extui %121 : vector<80x256xi1> to vector<80x256xi32>
    %123 = arith.sitofp %122 : vector<80x256xi32> to vector<80x256xf32>
    %cst_54 = arith.constant dense<0.000000e+00> : vector<32x256xf32>
    %124 = tpu.matmul %0, %118, %cst_54 {dimension_numbers = #tpu.dot_dimension_numbers<[1], [0], [0], [1], [0, 0, 1, 1], [], []>} : vector<32x96xf32>, vector<96x256xf32>, vector<32x256xf32> -> vector<32x256xf32>
    %cst_55 = arith.constant dense<0.000000e+00> : vector<32x256xf32>
    %125 = tpu.matmul %1, %123, %cst_55 {dimension_numbers = #tpu.dot_dimension_numbers<[1], [0], [0], [1], [0, 0, 1, 1], [], []>} : vector<32x80xf32>, vector<80x256xf32>, vector<32x256xf32> -> vector<32x256xf32>
    %126 = arith.mulf %124, %125 : vector<32x256xf32>
    %cst_56 = arith.constant dense<0.000000e+00> : vector<256xf32>
    %127 = vector.multi_reduction <add>, %126, %cst_56 [0] : vector<32x256xf32> to vector<256xf32>
    %128 = vector.shape_cast %127 : vector<256xf32> to vector<1x256xf32>
    %c6_57 = arith.constant 6 : index
    %c0_58 = arith.constant 0 : index
    %129 = vector.load %arg5[%c6_57, %c0_58] : memref<8x256xf32, #tpu.memory_space<vmem>>, vector<1x256xf32>
    tpu.vector_store %arg5[%c6_57, %c0_58], %128 {strides = array<i32>} : memref<8x256xf32, #tpu.memory_space<vmem>>, vector<1x256xf32>,
    %c7 = arith.constant 7 : index
    %c0_59 = arith.constant 0 : index
    %130 = vector.load %arg1[%c7, %c0_59] : memref<8x256xi32, #tpu.memory_space<vmem>>, vector<1x256xi32>
    %c7_60 = arith.constant 7 : index
    %c0_61 = arith.constant 0 : index
    %131 = vector.load %arg2[%c7_60, %c0_61] : memref<8x256xi32, #tpu.memory_space<vmem>>, vector<1x256xi32>
    %132 = vector.broadcast %130 : vector<1x256xi32> to vector<96x256xi32>
    %133 = vector.broadcast %2 : vector<96x1xi32> to vector<96x256xi32>
    %134 = arith.cmpi eq, %132, %133 : vector<96x256xi32>
    %135 = arith.extui %134 : vector<96x256xi1> to vector<96x256xi32>
    %136 = arith.sitofp %135 : vector<96x256xi32> to vector<96x256xf32>
    %137 = vector.broadcast %131 : vector<1x256xi32> to vector<80x256xi32>
    %138 = vector.broadcast %3 : vector<80x1xi32> to vector<80x256xi32>
    %139 = arith.cmpi eq, %137, %138 : vector<80x256xi32>
    %140 = arith.extui %139 : vector<80x256xi1> to vector<80x256xi32>
    %141 = arith.sitofp %140 : vector<80x256xi32> to vector<80x256xf32>
    %cst_62 = arith.constant dense<0.000000e+00> : vector<32x256xf32>
    %142 = tpu.matmul %0, %136, %cst_62 {dimension_numbers = #tpu.dot_dimension_numbers<[1], [0], [0], [1], [0, 0, 1, 1], [], []>} : vector<32x96xf32>, vector<96x256xf32>, vector<32x256xf32> -> vector<32x256xf32>
    %cst_63 = arith.constant dense<0.000000e+00> : vector<32x256xf32>
    %143 = tpu.matmul %1, %141, %cst_63 {dimension_numbers = #tpu.dot_dimension_numbers<[1], [0], [0], [1], [0, 0, 1, 1], [], []>} : vector<32x80xf32>, vector<80x256xf32>, vector<32x256xf32> -> vector<32x256xf32>
    %144 = arith.mulf %142, %143 : vector<32x256xf32>
    %cst_64 = arith.constant dense<0.000000e+00> : vector<256xf32>
    %145 = vector.multi_reduction <add>, %144, %cst_64 [0] : vector<32x256xf32> to vector<256xf32>
    %146 = vector.shape_cast %145 : vector<256xf32> to vector<1x256xf32>
    %c7_65 = arith.constant 7 : index
    %c0_66 = arith.constant 0 : index
    %147 = vector.load %arg5[%c7_65, %c0_66] : memref<8x256xf32, #tpu.memory_space<vmem>>, vector<1x256xf32>
    tpu.vector_store %arg5[%c7_65, %c0_66], %146 {strides = array<i32>} : memref<8x256xf32, #tpu.memory_space<vmem>>, vector<1x256xf32>,
    return
  }
  func.func @transform_0(%arg0: i32) -> (i32, i32) {
    %c0_i32 = arith.constant 0 : i32
    %c0_i32_0 = arith.constant 0 : i32
    return %arg0, %c0_i32 : i32, i32
  }
  func.func @transform_1(%arg0: i32) -> (i32, i32) {
    %c0_i32 = arith.constant 0 : i32
    %c0_i32_0 = arith.constant 0 : i32
    return %arg0, %c0_i32 : i32, i32
  }
  func.func @transform_2(%arg0: i32) -> (i32, i32) {
    %c0_i32 = arith.constant 0 : i32
    %c0_i32_0 = arith.constant 0 : i32
    %c0_i32_1 = arith.constant 0 : i32
    return %c0_i32, %c0_i32_0 : i32, i32
  }
  func.func @transform_3(%arg0: i32) -> (i32, i32) {
    %c0_i32 = arith.constant 0 : i32
    %c0_i32_0 = arith.constant 0 : i32
    %c0_i32_1 = arith.constant 0 : i32
    return %c0_i32, %c0_i32_0 : i32, i32
  }
  func.func @transform_4(%arg0: i32) -> (i32, i32) {
    %c0_i32 = arith.constant 0 : i32
    %c0_i32_0 = arith.constant 0 : i32
    return %arg0, %c0_i32 : i32, i32
  }
}

</mosaic_0001>

<bundles_post_ra>
// kernel: tpu_custom_call.1
= control target key start
LH: loop header
LB: loop body
LE: loop exit
PB: predicated region body
PF: predicated region fallthrough
CT: control target
= control target key end

     0   :  { %s6790_s0 = inlined_call_operand.hbm [shape: s32[16,256], index: 0, kind: input, shape index: {}]   ;;  %s6791_s1 = inlined_call_operand.hbm [shape: s32[16,256], index: 1, kind: input, shape index: {}]   ;;  %s6792_s2 = inlined_call_operand.hbm [shape: f32[32,96], index: 2, kind: input, shape index: {}]   ;;  %s6793_s3 = inlined_call_operand.hbm [shape: f32[32,80], index: 3, kind: input, shape index: {}]   ;;  %s6794_s4 = inlined_call_operand.hbm [shape: f32[16,256], index: 4, kind: output, shape index: {}]  }
   0x1   :  { %6799 = sst [smem:[#allocation16_spill]] %s6792_s2 }
   0x2   :  { %9 = vsyncpa [#allocation3], 0 }
   0x3   :  { %11 = vsyncpa [#allocation3 + $0x1], 0 }
   0x4   :  { %12 = vsyncpa [#allocation6], 0 }
   0x5   :  { %14 = vsyncpa [#allocation6 + $0x1], 0 }
   0x6   :  { %15 = vsyncpa [#allocation9], 0 }
   0x7   :  { %16 = vsyncpa [#allocation4], 0 }
   0x8   :  { %18 = vsyncpa [#allocation4 + $0x1], 0  ;;  %s4954_s15 = smov 0   ;;  %s4956_s16 = smov 0  }
   0x9   :  { %s4958_s17 = smov 0   ;;  %s4960_s18 = smov 0  }
   0xa LB: > { %s4975_s19 = sadd.s32 4294967295, %s4917_s18   ;;  %s3472_s20 = sadd.s32 4294967294, %s4917_s18   ;;  %s4917_s18 = sphi %s4960_s18, %s6822_s18   ;;  %s4913_s17 = sphi %s4958_s17, %s6821_s17   ;;  %s4909_s16 = sphi %s4956_s16, %s6820_s16   ;;  %s4905_s15 = sphi %s4954_s15, %s6819_s15  }
   0xb   : > { %p44_p0 = scmp.ne.s32.totalorder %s4909_s16, %s4905_s15  ;;  %p6795_p1 = scmp.eq.s32.totalorder %s4975_s19, 0 }
   0xc   : > { %p142_p3 = scmp.eq.s32.totalorder %s3472_s20, 1  ;;  %p3473_p5 = scmp.ge.s32.totalorder %s4917_s18, 1 }
   0xd   : > { %p4984_p4 = por %p6795_p1, %p44_p0  ;;  %p149_p7 = scmp.lt.s32.totalorder %s4917_s18, 3 }
   0xe   : > { %p4989_p6 = por %p142_p3, %p44_p0  ;;  %s4919_s24 = smov [#allocation7]  }
   0xf   : > { %s6800_s21 = scalar_select %p4984_p4, 1, 0 }
  0x10   : > { %s6801_s22 = scalar_select %p4989_p6, 1, 0 }
  0x11   : > { %p4994_p8 = pnand %p3473_p5, %p149_p7  ;;  %s161_s25 = sshll.u32 %s4919_s24, 4  ;;  %s4998_s25 = int_to_ptr.vmem [resolvable:$true] %s161_s25 }
  0x12   : > { %s4920_s27 = smov [#allocation8]   ;;  %s6804_s2 = sld [smem:[#allocation16_spill]] }
  0x13   : > { %s6802_s23 = scalar_select %p4994_p8, 1, 0 }
  0x14   : > { %p4652_p9 = pneg %p4994_p8  ;;  %s174_s28 = sshll.u32 %s4920_s27, 4  ;;  %s5009_s28 = int_to_ptr.vmem [resolvable:$true] %s174_s28 }
  0x16   : > { %p5005_p11 = pnand %p4652_p9, %p6795_p1 }
  0x18   : > { %s4723_s5 = scalar_lea.hbm %s6804_s2, 512  ;;  %p4725_p13 = pneg %p5005_p11 }
  0x19   : > { %p4724_p12 = scmp.ne.s32.totalorder %s6804_s2, %s4723_s5  ;;  %p4730_p5 = scmp.lt.u32.totalorder %s4723_s5, %s6804_s2 }
  0x1b   : > { %p4726_p0 = pnand %p4725_p13, %p4724_p12 }
  0x1d   : > { %p4727_p3 = pneg %p4726_p0 }
  0x1f   : > { %p4732_p7 = pnand %p4730_p5, %p4727_p3 }
  0x21   : > { %4735 = shalt.err (!%p4732_p7)
}
  0x22   : > { %s4736_s10 = scalar_lea.vmem %s4998_s25, 512  ;;  %p4744_p2 = scmp.lt.s32.totalorder %s4998_s25, %s4998_s25 }
  0x23   : > { %p4737_p9 = scmp.ne.s32.totalorder %s4998_s25, %s4736_s10  ;;  %p4745_p12 = scmp.lt.s32.totalorder %s4736_s10, %s4736_s10 }
  0x25   : > { %p4739_p10 = pnand %p4737_p9, %p4725_p13  ;;  %p4746_p0 = por %p4745_p12, %p4744_p2 }
  0x27   : > { %p4740_p1 = pneg %p4739_p10 }
  0x29   : > { %p4747_p6 = pnand %p4746_p0, %p4740_p1 }
  0x2b   : > { %4750 = shalt.err (!%p4747_p6)
}
  0x2c   : > { %s4921_s11 = smov 128   ;;  %s4922_s12 = smov 8  }
  0x2d   : > { %4655 = dma.hbm_to_vmem [thread:$0]  (!%p5005_p11), %s6804_s2, 512, %s4998_s25, [#allocation6], %s4921_s11, %s4921_s11, %s4922_s12  }
  0x2e   : > { %s4751_s27 = scalar_lea.hbm %s6793_s3, 512 }
  0x2f   : > { %p4752_p2 = scmp.ne.s32.totalorder %s6793_s3, %s4751_s27  ;;  %p4758_p10 = scmp.lt.u32.totalorder %s4751_s27, %s6793_s3 }
  0x31   : > { %p4754_p1 = pnand %p4752_p2, %p4725_p13 }
  0x33   : > { %p4755_p6 = pneg %p4754_p1 }
  0x35   : > { %p4760_p3 = pnand %p4758_p10, %p4755_p6 }
  0x37   : > { %4763 = shalt.err (!%p4760_p3)
}
  0x38   : > { %s4764_s25 = scalar_lea.vmem %s5009_s28, 512  ;;  %p4772_p12 = scmp.lt.s32.totalorder %s5009_s28, %s5009_s28 }
  0x39   : > { %p4765_p5 = scmp.ne.s32.totalorder %s5009_s28, %s4764_s25  ;;  %p4773_p0 = scmp.lt.s32.totalorder %s4764_s25, %s4764_s25 }
  0x3b   : > { %p4767_p7 = pnand %p4765_p5, %p4725_p13  ;;  %p4774_p2 = por %p4773_p0, %p4772_p12 }
  0x3d   : > { %p4768_p9 = pneg %p4767_p7 }
  0x3f   : > { %p4775_p1 = pnand %p4774_p2, %p4768_p9 }
  0x41   : > { %4778 = shalt.err (!%p4775_p1)
}
  0x42   : > { %4658 = dma.hbm_to_vmem [thread:$0]  (!%p5005_p11), %s6793_s3, 512, %s5009_s28, [#allocation9], %s4921_s11, %s4921_s11, %s4922_s12  }
  0x43   : > { %s5064_s9 = sadd.s32 1, %s4917_s18   ;;  %s31_s26 = sadd.s32 1, %s4913_s17 }
  0x44   : > { %s28_s10 = ssub.s32 %s4917_s18, %s5064_s9  ;;  %p38_p13 = scmp.ne.s32.totalorder %s4913_s17, %s4909_s16 }
  0x45   : > { %p29_p6 = scmp.eq.s32.totalorder %s28_s10, 0  ;;  %p39_p10 = scmp.eq.s32.totalorder %s4917_s18, 0 }
  0x46   : > { %p6805_p3 = scmp.eq.s32.totalorder %s4975_s19, 1  ;;  %p4672_p7 = scmp.lt.s32.totalorder %s4917_s18, 2 }
  0x47   : > { %s5080_s14 = scalar_select %p29_p6, %s4913_s17, %s31_s26  }
  0x48   : > { %p5074_p5 = por %p6805_p3, %p38_p13  ;;  %p40_p9 = por %p39_p10, %p38_p13 }
  0x49   : > { %s188_s20 = sand.u32 1, %s4913_s17   ;;  %s4283_s11 = sshll.u32 %s4917_s18, 8 }
  0x4a   : > { %s6806_s13 = scalar_select %p5074_p5, 1, 0 }
  0x4b   : > { %s5083_s28 = sshll.u32 %s188_s20, 4  ;;  %s5089_s27 = scalar_lea.hbm %s6790_s0, %s4283_s11 }
  0x4c   : > { %s192_s29 = scalar_lea.vmem [#allocation2], %s5083_s28  ;;  %p5094_p11 = pnand %p4672_p7, %p40_p9 }
  0x4d   : > { %s200_s30 = sshll.u32 %s192_s29, 4  ;;  %s5101_s7 = scalar_lea.hbm %s6791_s1, %s4283_s11  ;;  %s5092_s30 = int_to_ptr.vmem [resolvable:$true] %s200_s30 }
  0x4e   : > { %s207_s8 = sand.u32 1, %s4917_s18   ;;  %s189_s26 = scalar_lea.sflag [#allocation3], %s188_s20 }
  0x4f   : > { %s4779_s10 = scalar_lea.hbm %s5089_s27, 256  ;;  %p4781_p0 = pneg %p5094_p11 }
  0x50   : > { %p4780_p12 = scmp.ne.s32.totalorder %s5089_s27, %s4779_s10  ;;  %s4784_s29 = scalar_lea.hbm %s6790_s0, 512 }
  0x51   : > { %p4785_p13 = scmp.lt.u32.totalorder %s5089_s27, %s6790_s0  ;;  %p4786_p6 = scmp.lt.u32.totalorder %s4784_s29, %s4779_s10 }
  0x52   : > { %p4782_p2 = pnand %p4781_p0, %p4780_p12  ;;  %p4788_p3 = scmp.lt.u32.totalorder %s4779_s10, %s5089_s27 }
  0x53   : > { %p4787_p10 = por %p4786_p6, %p4785_p13 }
  0x54   : > { %p4783_p1 = pneg %p4782_p2 }
  0x55   : > { %p4789_p7 = por %p4788_p3, %p4787_p10 }
  0x57   : > { %p4790_p9 = pnand %p4789_p7, %p4783_p1 }
  0x59   : > { %4793 = shalt.err (!%p4790_p9)
}
  0x5a   : > { %s4794_s20 = scalar_lea.vmem %s5092_s30, 256  ;;  %s4923_s11 = smov [#allocation2]  }
  0x5b   : > { %p4795_p12 = scmp.ne.s32.totalorder %s5092_s30, %s4794_s20  ;;  %s4799_s25 = sshll.u32 %s4923_s11, 4  ;;  %s4800_s25 = int_to_ptr.vmem [resolvable:$false] %s4799_s25 }
  0x5c   : > { %s4801_s2 = scalar_lea.vmem %s4800_s25, 512  ;;  %p4802_p4 = scmp.lt.s32.totalorder %s5092_s30, %s4800_s25 }
  0x5d   : > { %p4797_p2 = pnand %p4795_p12, %p4781_p0  ;;  %p4803_p13 = scmp.lt.s32.totalorder %s4801_s2, %s4794_s20 }
  0x5f   : > { %p4798_p5 = pneg %p4797_p2  ;;  %p4804_p6 = por %p4803_p13, %p4802_p4 }
  0x61   : > { %p4805_p10 = pnand %p4804_p6, %p4798_p5 }
  0x63   : > { %4808 = shalt.err (!%p4805_p10)
}
  0x64   : > { %4662 = dma.hbm_to_vmem [thread:$0]  (!%p5094_p11), %s5089_s27, 256, %s5092_s30, %s189_s26  }
  0x65   : > { %s211_s10 = scalar_lea.vmem [#allocation5], %s5083_s28  ;;  %s208_s24 = scalar_lea.sflag [#allocation6], %s207_s8 }
  0x66   : > { %s219_s12 = sshll.u32 %s211_s10, 4  ;;  %s4809_s29 = scalar_lea.hbm %s5101_s7, 256  ;;  %s220_s12 = int_to_ptr.vmem [resolvable:$true] %s219_s12 }
  0x67   : > { %p4810_p4 = scmp.ne.s32.totalorder %s5101_s7, %s4809_s29  ;;  %s4814_s11 = scalar_lea.hbm %s6791_s1, 512 }
  0x68   : > { %p4815_p3 = scmp.lt.u32.totalorder %s5101_s7, %s6791_s1  ;;  %p4816_p7 = scmp.lt.u32.totalorder %s4814_s11, %s4809_s29 }
  0x69   : > { %p4812_p5 = pnand %p4810_p4, %p4781_p0  ;;  %p4818_p12 = scmp.lt.u32.totalorder %s4809_s29, %s5101_s7 }
  0x6a   : > { %p4817_p9 = por %p4816_p7, %p4815_p3 }
  0x6b   : > { %p4813_p1 = pneg %p4812_p5 }
  0x6c   : > { %p4819_p2 = por %p4818_p12, %p4817_p9 }
  0x6e   : > { %p4820_p13 = pnand %p4819_p2, %p4813_p1 }
  0x70   : > { %4823 = shalt.err (!%p4820_p13)
}
  0x71   : > { %s4824_s28 = scalar_lea.vmem %s220_s12, 256  ;;  %s4924_s27 = smov [#allocation5]  }
  0x72   : > { %p4825_p6 = scmp.ne.s32.totalorder %s220_s12, %s4824_s28  ;;  %s4829_s30 = sshll.u32 %s4924_s27, 4  ;;  %s4830_s30 = int_to_ptr.vmem [resolvable:$false] %s4829_s30 }
  0x73   : > { %s4831_s8 = scalar_lea.vmem %s4830_s30, 512  ;;  %p4832_p5 = scmp.lt.s32.totalorder %s220_s12, %s4830_s30 }
  0x74   : > { %p4827_p10 = pnand %p4825_p6, %p4781_p0  ;;  %p4833_p8 = scmp.lt.s32.totalorder %s4831_s8, %s4824_s28 }
  0x76   : > { %p4828_p4 = pneg %p4827_p10  ;;  %p4834_p3 = por %p4833_p8, %p4832_p5 }
  0x78   : > { %p4835_p7 = pnand %p4834_p3, %p4828_p4 }
  0x7a   : > { %4838 = shalt.err (!%p4835_p7)
}
  0x7b   : > { %4665 = dma.hbm_to_vmem [thread:$0]  (!%p5094_p11), %s5101_s7, 256, %s220_s12, %s208_s24  }
  0x7c   : > { %p6808_p1 = scmp.ne.s32.totalorder %s6802_s23, 0 }
  0x7d   : > { %s5154_s26 = sand.u32 (!%p6808_p1), 1, %s4909_s16   ;;  %p6809_p8 = scmp.ne.s32.totalorder (!%p6808_p1), %s6800_s21, 0 }
  0x7e   : > { %228 = sbr.rel (%p6808_p1) target bundleno = 593 (0x251), region = 36  ;;  %s5157_s10 = sshll.u32 (!%p6808_p1), %s5154_s26, 4 }
  0x7f   : > { %s231_s29 = scalar_lea.sflag (!%p6808_p1), [#allocation3], %s5154_s26  ;;  %s5161_s6 = scalar_lea.vmem (!%p6808_p1), [#allocation2], %s5157_s10 }
  0x85   : > { %4884 = dma.done.wait (%p6809_p8), %s231_s29, 256  }
  0x86   : > { %4886 = vsyncadd (%p6809_p8), %s231_s29, 4294967040  ;;  %s239_s23 = sand.u32 1, %s4975_s19   ;;  %s5169_s7 = scalar_lea.vmem [#allocation5], %s5157_s10 }
  0x87   : > { %s240_s5 = scalar_lea.sflag [#allocation6], %s239_s23 }
  0x88   : > { %4888 = dma.done.wait (%p6809_p8), %s240_s5, 256  }
  0x89   : > { %4890 = vsyncadd (%p6809_p8), %s240_s5, 4294967040  ;;  %p6810_p11 = scmp.eq.s32.totalorder %s4975_s19, 0 }
  0x8b   : > { %4892 = dma.done.wait (%p6810_p11), [#allocation6], 512   ;;  %p6811_p0 = pmov %p6810_p11 }
  0x8d   : > { %4894 = vsyncadd (%p6811_p0), [#allocation6], 4294966784  ;;  %p6812_p9 = pmov %p6811_p0 }
  0x8e   : > { %p6813_p12 = pmov %p6811_p0 }
  0x8f   : > { %4896 = dma.done.wait (%p6812_p9), [#allocation9], 512  }
  0x90   : > { %4898 = vsyncadd (%p6813_p12), [#allocation9], 4294966784  ;;  %v289_v0 = vlaneseq  ;;  %v4925_v1 = vmov 0.0   ;;  %v302_v8 = vld [vmem:[%s5161_s6] ss:$8 sm:$0x3] }
  0x91   : > { %631 = vmatprep.mubr.f32.mxu1 %v4925_v1  ;;  %529 = vmatprep.mubr.f32.mxu0 %v4925_v1  ;;  %v303_v9 = vld [vmem:[%s5169_s7] ss:$8 sm:$0x3]  ;;  %v4926_v14 = vmov 1.0|1.0   ;;  %s6701_s21 = scalar_lea.vmem [#allocation10], %s5157_s10 }
  0x92   : > { %v5186_v2 = vshrl.u32 %v289_v0, 7  ;;  %v3585_v21 = vld [vmem:[%s5161_s6 + $0x1] ss:$8 sm:$0x3]  ;;  %s4285_s12 = sshll.u32 %s4975_s19, 8  ;;  %s3360_s24 = sshll.u32 %s6701_s21, 4  ;;  %s6745_s24 = int_to_ptr.vmem [resolvable:$true] %s3360_s24 }
  0x93   : > { %v3586_v25 = vld [vmem:[%s5169_s7 + $0x1] ss:$8 sm:$0x3]  ;;  %v3684_v36 = vld [vmem:[%s5161_s6 + $0x2] ss:$8 sm:$0x3]  ;;  %s6743_s25 = scalar_lea.hbm %s6794_s4, %s4285_s12 }
  0x94   : > { %v5189_v3 = vsub.s32 1, %v5186_v2  ;;  %v5192_v4 = vsub.s32 0, %v5186_v2  ;;  %v5195_v5 = vadd.s32 8, %v5186_v2  ;;  %v5198_v6 = vadd.s32 16, %v5186_v2  ;;  %v5367_v28 = vld [vmem:[#allocation8] sm:$0xff]  ;;  %v5404_v31 = vld [vmem:[#allocation8 + $0x8] sm:$0xff] }
  0x95   : > { %v5201_v7 = vadd.s32 24, %v5186_v2  ;;  %v5239_v15 = vadd.s32 32, %v5186_v2  ;;  %v5242_v16 = vadd.s32 40, %v5186_v2  ;;  %v5265_v17 = vadd.s32 48, %v5186_v2  ;;  %v5392_v30 = vld [vmem:[#allocation7] sm:$0xff]  ;;  %v5425_v32 = vld [vmem:[#allocation7 + $0x8] sm:$0xff] }
  0x96   : > { %v5206_v10 = vrot.slane %v302_v8, %v5189_v3  ;;  %v5209_v11 = vrot.slane %v303_v9, %v5189_v3  ;;  %v5212_v12 = vrot.slane %v302_v8, %v5192_v4  ;;  %v5215_v13 = vrot.slane %v303_v9, %v5192_v4  ;;  %v5442_v33 = vld [vmem:[#allocation8 + $0x10] sm:$0xff]  ;;  %v5481_v35 = vld [vmem:[#allocation8 + $0x18] sm:$0xff]  ;;  %s3346_s2 = scalar_lea.sflag [#allocation4], %s5154_s26  ;;  %s4839_s19 = scalar_lea.vmem %s6745_s24, 256 }
  0x97   : > { %v5268_v18 = vadd.s32 56, %v5186_v2  ;;  %v5291_v19 = vadd.s32 64, %v5186_v2  ;;  %v5294_v20 = vadd.s32 72, %v5186_v2  ;;  %v5318_v22 = vadd.s32 80, %v5186_v2  ;;  %v5464_v34 = vld [vmem:[#allocation7 + $0x10] sm:$0xff]  ;;  %v5504_v37 = vld [vmem:[#allocation7 + $0x18] sm:$0xff]  ;;  %p4840_p2 = scmp.ne.s32.totalorder %s6745_s24, %s4839_s19 }
  0x98   : > { %vm313_vm0 = vcmp.eq.s32.totalorder %v5206_v10, %v5186_v2  ;;  %vm315_vm1 = vcmp.eq.s32.totalorder %v5206_v10, %v5195_v5  ;;  %vm393_vm2 = vcmp.eq.s32.totalorder %v5209_v11, %v5186_v2  ;;  %vm395_vm3 = vcmp.eq.s32.totalorder %v5209_v11, %v5195_v5  ;;  %v3685_v38 = vld [vmem:[%s5169_s7 + $0x2] ss:$8 sm:$0x3]  ;;  %v3783_v43 = vld [vmem:[%s5161_s6 + $0x3] ss:$8 sm:$0x3] }
  0x99   : > { %vm4286_vm4 = vmpackc.low %vm315_vm1, %vm313_vm0  ;;  %vm312_vm5 = vcmp.eq.s32.totalorder %v5212_v12, %v5186_v2  ;;  %vm314_vm6 = vcmp.eq.s32.totalorder %v5212_v12, %v5195_v5  ;;  %vm392_vm7 = vcmp.eq.s32.totalorder %v5215_v13, %v5186_v2  ;;  %vm394_vm8 = vcmp.eq.s32.totalorder %v5215_v13, %v5195_v5  ;;  %v3784_v45 = vld [vmem:[%s5169_s7 + $0x3] ss:$8 sm:$0x3]  ;;  %v3882_v49 = vld [vmem:[%s5161_s6 + $0x4] ss:$8 sm:$0x3] }
  0x9a   : > { %4287 = vmatprep.subr.msk.bf16.mxu0 %vm4286_vm4, %v4926_v14  ;;  %vm4310_vm9 = vmpackc.low %vm395_vm3, %vm393_vm2  ;;  %vm317_vm10 = vcmp.eq.s32.totalorder %v5206_v10, %v5198_v6  ;;  %vm319_vm11 = vcmp.eq.s32.totalorder %v5206_v10, %v5201_v7  ;;  %vm397_vm13 = vcmp.eq.s32.totalorder %v5209_v11, %v5198_v6  ;;  %vm399_vm14 = vcmp.eq.s32.totalorder %v5209_v11, %v5201_v7  ;;  %v3883_v50 = vld [vmem:[%s5169_s7 + $0x4] ss:$8 sm:$0x3]  ;;  %v3981_v55 = vld [vmem:[%s5161_s6 + $0x5] ss:$8 sm:$0x3] }
  0x9b   : > { %4311 = vmatprep.subr.msk.bf16.mxu1 %vm4310_vm9, %v4926_v14  ;;  %vm4288_vm12 = vmpackc.low %vm314_vm6, %vm312_vm5  ;;  %vm316_vm0 = vcmp.eq.s32.totalorder %v5212_v12, %v5198_v6  ;;  %vm318_vm1 = vcmp.eq.s32.totalorder %v5212_v12, %v5201_v7  ;;  %vm396_vm3 = vcmp.eq.s32.totalorder %v5215_v13, %v5198_v6  ;;  %vm398_vm4 = vcmp.eq.s32.totalorder %v5215_v13, %v5201_v7  ;;  %v3982_v57 = vld [vmem:[%s5169_s7 + $0x5] ss:$8 sm:$0x3]  ;;  %v4080_v61 = vld [vmem:[%s5161_s6 + $0x6] ss:$8 sm:$0x3] }
  0x9c   : > { %4289 = vmatpush1.bf16.msk.msra.mxu0 %vm4288_vm12, %v4926_v14  ;;  %vm4312_vm15 = vmpackc.low %vm394_vm8, %vm392_vm7  ;;  %vm321_vm6 = vcmp.eq.s32.totalorder %v5206_v10, %v5239_v15  ;;  %vm323_vm7 = vcmp.eq.s32.totalorder %v5206_v10, %v5242_v16  ;;  %vm401_vm9 = vcmp.eq.s32.totalorder %v5209_v11, %v5239_v15  ;;  %vm320_vm12 = vcmp.eq.s32.totalorder %v5212_v12, %v5239_v15  ;;  %v4081_v62 = vld [vmem:[%s5169_s7 + $0x6] ss:$8 sm:$0x3]  ;;  %p6816_p13 = scmp.ne.s32.totalorder %s6806_s13, 0  ;;  %s4928_s28 = smov [#allocation10]  }
  0x9d   : > { %4313 = vmatpush1.bf16.msk.msra.mxu1 %vm4312_vm15, %v4926_v14  ;;  %vm4290_vm2 = vmpackc.low %vm319_vm11, %vm317_vm10  ;;  %vm403_vm10 = vcmp.eq.s32.totalorder %v5209_v11, %v5242_v16  ;;  %vm400_vm15 = vcmp.eq.s32.totalorder %v5215_v13, %v5239_v15  ;;  %v5321_v23 = vadd.s32 88, %v5186_v2  ;;  %v5329_v24 = vrot.slane %v3585_v21, %v5189_v3  ;;  %s4843_s27 = sshll.u32 %s4928_s28, 4  ;;  %s4844_s27 = int_to_ptr.vmem [resolvable:$false] %s4843_s27 }
  0x9e   : > { %4291 = vmatprep.subr.msk.bf16.mxu0 %vm4290_vm2, %v4926_v14  ;;  %vm4314_vm5 = vmpackc.low %vm399_vm14, %vm397_vm13  ;;  %vm322_vm13 = vcmp.eq.s32.totalorder %v5212_v12, %v5242_v16  ;;  %vm325_vm2 = vcmp.eq.s32.totalorder %v5206_v10, %v5265_v17  ;;  %v5346_v26 = vrot.slane %v3585_v21, %v5192_v4  ;;  %v5359_v27 = vrot.slane %v3586_v25, %v5189_v3  ;;  %v6370_v21 = vld [vmem:[#allocation8 + $0x8] sm:$0xff]  ;;  %p4841_p6 = pnand %p4840_p2, %p6816_p13  ;;  %s4845_s30 = scalar_lea.vmem %s4844_s27, 512 }
  0x9f   : > { %4315 = vmatprep.subr.msk.bf16.mxu1 %vm4314_vm5, %v4926_v14  ;;  %vm4292_vm8 = vmpackc.low %vm318_vm1, %vm316_vm0  ;;  %vm402_vm0 = vcmp.eq.s32.totalorder %v5215_v13, %v5242_v16  ;;  %vm405_vm5 = vcmp.eq.s32.totalorder %v5209_v11, %v5265_v17  ;;  %v5374_v29 = vrot.slane %v3586_v25, %v5192_v4  ;;  %v5538_v39 = vrot.slane %v3684_v36, %v5189_v3  ;;  %v6418_v25 = vld [vmem:[#allocation8 + $0x10] sm:$0xff]  ;;  %p4846_p4 = scmp.lt.s32.totalorder %s6745_s24, %s4844_s27  ;;  %p4847_p5 = scmp.lt.s32.totalorder %s4845_s30, %s4839_s19 }
  0xa0   : > { %4293 = vmatpush1.bf16.msk.msra.mxu0 %vm4292_vm8, %v4926_v14  ;;  %vm4316_vm11 = vmpackc.low %vm398_vm4, %vm396_vm3  ;;  %vm327_vm3 = vcmp.eq.s32.totalorder %v5206_v10, %v5268_v18  ;;  %vm324_vm8 = vcmp.eq.s32.totalorder %v5212_v12, %v5265_v17  ;;  %v5554_v40 = vrot.slane %v3685_v38, %v5189_v3  ;;  %v5562_v41 = vrot.slane %v3684_v36, %v5192_v4  ;;  %p4842_p10 = pneg %p4841_p6 }
  0xa1   : > { %4317 = vmatpush1.bf16.msk.msra.mxu1 %vm4316_vm11, %v4926_v14  ;;  %vm4294_vm14 = vmpackc.low %vm323_vm7, %vm321_vm6  ;;  %vm407_vm6 = vcmp.eq.s32.totalorder %v5209_v11, %v5268_v18  ;;  %vm404_vm11 = vcmp.eq.s32.totalorder %v5215_v13, %v5265_v17  ;;  %v5577_v42 = vrot.slane %v3685_v38, %v5192_v4  ;;  %v5704_v44 = vrot.slane %v3783_v43, %v5189_v3  ;;  %p4848_p3 = por %p4847_p5, %p4846_p4 }
  0xa2   : > { %4295 = vmatprep.subr.msk.bf16.mxu0 %vm4294_vm14, %v4926_v14  ;;  %vm4318_vm1 = vmpackc.low %vm403_vm10, %vm401_vm9  ;;  %vm326_vm9 = vcmp.eq.s32.totalorder %v5212_v12, %v5268_v18  ;;  %vm329_vm14 = vcmp.eq.s32.totalorder %v5206_v10, %v5291_v19  ;;  %v5731_v46 = vrot.slane %v3783_v43, %v5192_v4  ;;  %v5755_v47 = vrot.slane %v3784_v45, %v5189_v3 }
  0xa3   : > { %4319 = vmatprep.subr.msk.bf16.mxu1 %vm4318_vm1, %v4926_v14  ;;  %vm4296_vm4 = vmpackc.low %vm322_vm13, %vm320_vm12  ;;  %vm406_vm12 = vcmp.eq.s32.totalorder %v5215_v13, %v5268_v18  ;;  %vm409_vm1 = vcmp.eq.s32.totalorder %v5209_v11, %v5291_v19  ;;  %v5768_v48 = vrot.slane %v3784_v45, %v5192_v4  ;;  %v5890_v51 = vrot.slane %v3882_v49, %v5189_v3  ;;  %p4849_p7 = pnand %p4848_p3, %p4842_p10 }
  0xa4   : > { %4297 = vmatpush1.bf16.msk.msra.mxu0 %vm4296_vm4, %v4926_v14  ;;  %vm4320_vm7 = vmpackc.low %vm402_vm0, %vm400_vm15  ;;  %vm331_vm15 = vcmp.eq.s32.totalorder %v5206_v10, %v5294_v20  ;;  %vm328_vm4 = vcmp.eq.s32.totalorder %v5212_v12, %v5291_v19  ;;  %v5902_v52 = vrot.slane %v3883_v50, %v5189_v3  ;;  %v5914_v53 = vrot.slane %v3882_v49, %v5192_v4 }
  0xa5   : > { %4321 = vmatpush1.bf16.msk.msra.mxu1 %vm4320_vm7, %v4926_v14  ;;  %vm4298_vm10 = vmpackc.low %vm327_vm3, %vm325_vm2  ;;  %vm411_vm2 = vcmp.eq.s32.totalorder %v5209_v11, %v5294_v20  ;;  %vm408_vm7 = vcmp.eq.s32.totalorder %v5215_v13, %v5291_v19  ;;  %v5929_v54 = vrot.slane %v3883_v50, %v5192_v4  ;;  %v6060_v56 = vrot.slane %v3981_v55, %v5189_v3  ;;  %v6327_v11 = vld [vmem:[#allocation7] sm:$0xff] }
  0xa6   : > { %4299 = vmatprep.subr.msk.bf16.mxu0 %vm4298_vm10, %v4926_v14  ;;  %vm4322_vm13 = vmpackc.low %vm407_vm6, %vm405_vm5  ;;  %vm330_vm5 = vcmp.eq.s32.totalorder %v5212_v12, %v5294_v20  ;;  %vm333_vm10 = vcmp.eq.s32.totalorder %v5206_v10, %v5318_v22  ;;  %v6087_v58 = vrot.slane %v3981_v55, %v5192_v4  ;;  %v6111_v59 = vrot.slane %v3982_v57, %v5189_v3 }
  0xa7   : > { %4323 = vmatprep.subr.msk.bf16.mxu1 %vm4322_vm13, %v4926_v14  ;;  %vm4300_vm0 = vmpackc.low %vm326_vm9, %vm324_vm8  ;;  %vm410_vm8 = vcmp.eq.s32.totalorder %v5215_v13, %v5294_v20  ;;  %vm719_vm13 = vcmp.eq.s32.totalorder %v5329_v24, %v5186_v2  ;;  %v6124_v60 = vrot.slane %v3982_v57, %v5192_v4  ;;  %v6246_v63 = vrot.slane %v4080_v61, %v5189_v3  ;;  %v6366_v13 = vld [vmem:[#allocation7 + $0x8] sm:$0xff] }
  0xa8   : > { %4301 = vmatpush1.bf16.msk.msra.mxu0 %vm4300_vm0, %v4926_v14  ;;  %vm4324_vm3 = vmpackc.low %vm406_vm12, %vm404_vm11  ;;  %vm335_vm11 = vcmp.eq.s32.totalorder %v5206_v10, %v5321_v23  ;;  %vm332_vm0 = vcmp.eq.s32.totalorder %v5212_v12, %v5318_v22  ;;  %v6258_v8 = vrot.slane %v4081_v62, %v5189_v3  ;;  %v6270_v9 = vrot.slane %v4080_v61, %v5192_v4 }
  0xa9   : > { %4325 = vmatpush1.bf16.msk.msra.mxu1 %vm4324_vm3, %v4926_v14  ;;  %vm4302_vm6 = vmpackc.low %vm331_vm15, %vm329_vm14  ;;  %vm721_vm14 = vcmp.eq.s32.totalorder %v5329_v24, %v5195_v5  ;;  %vm554_vm3 = vcmask 654336   ;;  %v6285_v10 = vrot.slane %v4081_v62, %v5192_v4 }
  0xaa   : > { %4303 = vmatprep.subr.msk.bf16.mxu0 %vm4302_vm6, %v4926_v14  ;;  %vm4326_vm9 = vmpackc.low %vm411_vm2, %vm409_vm1  ;;  %vm334_vm1 = vcmp.eq.s32.totalorder %v5212_v12, %v5321_v23  ;;  %v6331_v12 = vld [vmem:[#allocation8] sm:$0xff] }
  0xab   : > { %4327 = vmatprep.subr.msk.bf16.mxu1 %vm4326_vm9, %v4926_v14  ;;  %vm4304_vm12 = vmpackc.low %vm330_vm5, %vm328_vm4  ;;  %vm718_vm4 = vcmp.eq.s32.totalorder %v5346_v26, %v5186_v2  ;;  %vm720_vm5 = vcmp.eq.s32.totalorder %v5346_v26, %v5195_v5 }
  0xac   : > { %4305 = vmatpush1.bf16.msk.msra.mxu0 %vm4304_vm12, %v4926_v14  ;;  %vm4328_vm15 = vmpackc.low %vm410_vm8, %vm408_vm7  ;;  %vm723_vm7 = vcmp.eq.s32.totalorder %v5329_v24, %v5198_v6  ;;  %vm725_vm8 = vcmp.eq.s32.totalorder %v5329_v24, %v5201_v7 }
  0xad   : > { %4329 = vmatpush1.bf16.msk.msra.mxu1 %vm4328_vm15, %v4926_v14  ;;  %vm4306_vm2 = vmpackc.low %vm335_vm11, %vm333_vm10  ;;  %vm799_vm10 = vcmp.eq.s32.totalorder %v5359_v27, %v5186_v2  ;;  %vm801_vm11 = vcmp.eq.s32.totalorder %v5359_v27, %v5195_v5  ;;  %vm724_vm15 = vcmp.eq.s32.totalorder %v5346_v26, %v5201_v7 }
  0xae   : > { %4307 = vmatprep.subr.msk.bf16.mxu0 %vm4306_vm2, %v4926_v14  ;;  %vm4330_vm6 = vmpackc.low %vm721_vm14, %vm719_vm13  ;;  %vm452_vm13 = vcmask 785408   ;;  %vm722_vm14 = vcmp.eq.s32.totalorder %v5346_v26, %v5198_v6  ;;  %vm800_vm2 = vcmp.eq.s32.totalorder %v5374_v29, %v5195_v5 }
  0xaf   : > { %4331 = vmatprep.subr.msk.bf16.mxu1 %vm4330_vm6, %v4926_v14  ;;  %vm4308_vm9 = vmpackc.low %vm334_vm1, %vm332_vm0  ;;  %vm798_vm1 = vcmp.eq.s32.totalorder %v5374_v29, %v5186_v2  ;;  %vm729_vm6 = vcmp.eq.s32.totalorder %v5329_v24, %v5242_v16 }
  0xb0   : > { %3581 = vmatmul.mubr.msk.f32.vlgmr.msra.gmra.mrb[0].mxu1 %vm554_vm3, %v5367_v28  ;;  %4309 = vmatpush1.bf16.msk.msra.mxu0 %vm4308_vm9, %v4926_v14  ;;  %vm4332_vm12 = vmpackc.low %vm720_vm5, %vm718_vm4  ;;  %vm727_vm5 = vcmp.eq.s32.totalorder %v5329_v24, %v5239_v15  ;;  %vm805_vm9 = vcmp.eq.s32.totalorder %v5359_v27, %v5201_v7 }
  0xb1   : > { %4333 = vmatpush1.bf16.msk.msra.mxu1 %vm4332_vm12, %v4926_v14  ;;  %vm4334_vm0 = vmpackc.low %vm725_vm8, %vm723_vm7  ;;  %637 = vmatprep.mubr.f32.mxu1 %v4925_v1  ;;  %vm803_vm8 = vcmp.eq.s32.totalorder %v5359_v27, %v5198_v6 }
  0xb2   : > { %4335 = vmatprep.subr.msk.bf16.mxu1 %vm4334_vm0, %v4926_v14  ;;  %vm4354_vm4 = vmpackc.low %vm801_vm11, %vm799_vm10  ;;  %vm726_vm10 = vcmp.eq.s32.totalorder %v5346_v26, %v5239_v15  ;;  %vm728_vm11 = vcmp.eq.s32.totalorder %v5346_v26, %v5242_v16  ;;  %vm804_vm0 = vcmp.eq.s32.totalorder %v5374_v29, %v5201_v7 }
  0xb3   : > { %3557 = vmatmul.mubr.msk.f32.vlgmr.msra.gmra.mrb[0].mxu0 %vm452_vm13, %v5392_v30  ;;  %4355 = vmatprep.subr.msk.bf16.mxu0 %vm4354_vm4, %v4926_v14  ;;  %vm4336_vm7 = vmpackc.low %vm724_vm15, %vm722_vm14  ;;  %vm802_vm15 = vcmp.eq.s32.totalorder %v5374_v29, %v5198_v6  ;;  %vm733_vm4 = vcmp.eq.s32.totalorder %v5329_v24, %v5268_v18 }
  0xb4   : > { %vm4356_vm12 = vmpackc.low %vm800_vm2, %vm798_vm1  ;;  %535 = vmatprep.mubr.f32.mxu0 %v4925_v1  ;;  %3582 = vmatmul.mubr.msk.f32.gmra.mrb[2].mxu1 %vm554_vm3, %v5404_v31  ;;  %vm731_vm2 = vcmp.eq.s32.totalorder %v5329_v24, %v5265_v17 }
  0xb5   : > { %4337 = vmatpush1.bf16.msk.msra.mxu1 %vm4336_vm7, %v4926_v14  ;;  %4357 = vmatpush1.bf16.msk.msra.mxu0 %vm4356_vm12, %v4926_v14  ;;  %vm4338_vm14 = vmpackc.low %vm729_vm6, %vm727_vm5  ;;  %vm807_vm6 = vcmp.eq.s32.totalorder %v5359_v27, %v5239_v15  ;;  %vm809_vm7 = vcmp.eq.s32.totalorder %v5359_v27, %v5242_v16  ;;  %vm732_vm12 = vcmp.eq.s32.totalorder %v5346_v26, %v5268_v18 }
  0xb6   : > { %4339 = vmatprep.subr.msk.bf16.mxu1 %vm4338_vm14, %v4926_v14  ;;  %vm4358_vm1 = vmpackc.low %vm805_vm9, %vm803_vm8  ;;  %643 = vmatprep.mubr.f32.mxu1 %v4925_v1  ;;  %vm730_vm9 = vcmp.eq.s32.totalorder %v5346_v26, %v5265_v17  ;;  %vm808_vm14 = vcmp.eq.s32.totalorder %v5374_v29, %v5242_v16 }
  0xb7   : > { %3558 = vmatmul.mubr.msk.f32.gmra.mrb[2].mxu0 %vm452_vm13, %v5425_v32  ;;  %4359 = vmatprep.subr.msk.bf16.mxu0 %vm4358_vm1, %v4926_v14  ;;  %vm4340_vm5 = vmpackc.low %vm728_vm11, %vm726_vm10  ;;  %vm806_vm11 = vcmp.eq.s32.totalorder %v5374_v29, %v5239_v15  ;;  %vm737_vm1 = vcmp.eq.s32.totalorder %v5329_v24, %v5294_v20 }
  0xb8   : > { %vm4360_vm8 = vmpackc.low %vm804_vm0, %vm802_vm15  ;;  %541 = vmatprep.mubr.f32.mxu0 %v4925_v1  ;;  %3583 = vmatmul.mubr.msk.f32.gmra.mrb[4].mxu1 %vm554_vm3, %v5442_v33  ;;  %vm735_vm0 = vcmp.eq.s32.totalorder %v5329_v24, %v5291_v19 }
  0xb9   : > { %4341 = vmatpush1.bf16.msk.msra.mxu1 %vm4340_vm5, %v4926_v14  ;;  %4361 = vmatpush1.bf16.msk.msra.mxu0 %vm4360_vm8, %v4926_v14  ;;  %vm4342_vm10 = vmpackc.low %vm733_vm4, %vm731_vm2  ;;  %vm811_vm4 = vcmp.eq.s32.totalorder %v5359_v27, %v5265_v17  ;;  %vm813_vm5 = vcmp.eq.s32.totalorder %v5359_v27, %v5268_v18  ;;  %vm736_vm8 = vcmp.eq.s32.totalorder %v5346_v26, %v5294_v20 }
  0xba   : > { %4343 = vmatprep.subr.msk.bf16.mxu1 %vm4342_vm10, %v4926_v14  ;;  %vm4362_vm15 = vmpackc.low %vm809_vm7, %vm807_vm6  ;;  %649 = vmatprep.mubr.f32.mxu1 %v4925_v1  ;;  %vm734_vm7 = vcmp.eq.s32.totalorder %v5346_v26, %v5291_v19  ;;  %vm812_vm10 = vcmp.eq.s32.totalorder %v5374_v29, %v5268_v18 }
  0xbb   : > { %3559 = vmatmul.mubr.msk.f32.gmra.mrb[4].mxu0 %vm452_vm13, %v5464_v34  ;;  %4363 = vmatprep.subr.msk.bf16.mxu0 %vm4362_vm15, %v4926_v14  ;;  %vm4344_vm2 = vmpackc.low %vm732_vm12, %vm730_vm9  ;;  %vm810_vm12 = vcmp.eq.s32.totalorder %v5374_v29, %v5265_v17  ;;  %vm741_vm15 = vcmp.eq.s32.totalorder %v5329_v24, %v5321_v23 }
  0xbc   : > { %vm4364_vm6 = vmpackc.low %vm808_vm14, %vm806_vm11  ;;  %547 = vmatprep.mubr.f32.mxu0 %v4925_v1  ;;  %3584 = vmatmul.mubr.msk.f32.gmra.mrb[6].mxu1 %vm554_vm3, %v5481_v35  ;;  %vm739_vm14 = vcmp.eq.s32.totalorder %v5329_v24, %v5318_v22  ;;  %v6414_v24 = vld [vmem:[#allocation7 + $0x10] sm:$0xff] }
  0xbd   : > { %4345 = vmatpush1.bf16.msk.msra.mxu1 %vm4344_vm2, %v4926_v14  ;;  %4365 = vmatpush1.bf16.msk.msra.mxu0 %vm4364_vm6, %v4926_v14  ;;  %vm4346_vm9 = vmpackc.low %vm737_vm1, %vm735_vm0  ;;  %vm815_vm1 = vcmp.eq.s32.totalorder %v5359_v27, %v5291_v19  ;;  %vm817_vm2 = vcmp.eq.s32.totalorder %v5359_v27, %v5294_v20  ;;  %vm740_vm6 = vcmp.eq.s32.totalorder %v5346_v26, %v5321_v23 }
  0xbe   : > { %4347 = vmatprep.subr.msk.bf16.mxu1 %vm4346_vm9, %v4926_v14  ;;  %vm4366_vm11 = vmpackc.low %vm813_vm5, %vm811_vm4  ;;  %922 = vmatprep.mubr.f32.mxu1 %v4925_v1  ;;  %vm738_vm5 = vcmp.eq.s32.totalorder %v5346_v26, %v5318_v22  ;;  %vm816_vm9 = vcmp.eq.s32.totalorder %v5374_v29, %v5294_v20  ;;  %v4179_v26 = vld [vmem:[%s5161_s6 + $0x7] ss:$8 sm:$0x3] }
  0xbf   : > { %3560 = vmatmul.mubr.msk.f32.gmra.mrb[6].mxu0 %vm452_vm13, %v5504_v37  ;;  %4367 = vmatprep.subr.msk.bf16.mxu0 %vm4366_vm11, %v4926_v14  ;;  %vm4348_vm0 = vmpackc.low %vm736_vm8, %vm734_vm7  ;;  %vm814_vm8 = vcmp.eq.s32.totalorder %v5374_v29, %v5291_v19  ;;  %vm1098_vm11 = vcmp.eq.s32.totalorder %v5538_v39, %v5195_v5  ;;  %v6467_v27 = vrot.slane %v4179_v26, %v5189_v3  ;;  %v6473_v29 = vld [vmem:[#allocation8 + $0x18] sm:$0xff] }
  0xc0   : > { %vm4368_vm4 = vmpackc.low %vm812_vm10, %vm810_vm12  ;;  %1011 = vmatprep.mubr.f32.mxu0 %v4925_v1  ;;  %vm1096_vm10 = vcmp.eq.s32.totalorder %v5538_v39, %v5186_v2 }
  0xc1   : > { %4349 = vmatpush1.bf16.msk.msra.mxu1 %vm4348_vm0, %v4926_v14  ;;  %4369 = vmatpush1.bf16.msk.msra.mxu0 %vm4368_vm4, %v4926_v14  ;;  %vm4350_vm7 = vmpackc.low %vm741_vm15, %vm739_vm14  ;;  %vm1176_vm15 = vcmp.eq.s32.totalorder %v5554_v40, %v5186_v2  ;;  %vm1178_vm0 = vcmp.eq.s32.totalorder %v5554_v40, %v5195_v5 }
  0xc2   : > { %4351 = vmatprep.subr.msk.bf16.mxu1 %vm4350_vm7, %v4926_v14  ;;  %vm4370_vm12 = vmpackc.low %vm817_vm2, %vm815_vm1  ;;  %vm1095_vm1 = vcmp.eq.s32.totalorder %v5562_v41, %v5186_v2  ;;  %vm1097_vm2 = vcmp.eq.s32.totalorder %v5562_v41, %v5195_v5 }
  0xc3   : > { %4371 = vmatprep.subr.msk.bf16.mxu0 %vm4370_vm12, %v4926_v14  ;;  %vm4352_vm14 = vmpackc.low %vm740_vm6, %vm738_vm5  ;;  %vm1175_vm5 = vcmp.eq.s32.totalorder %v5577_v42, %v5186_v2  ;;  %vm1177_vm6 = vcmp.eq.s32.totalorder %v5577_v42, %v5195_v5  ;;  %vm1102_vm12 = vcmp.eq.s32.totalorder %v5538_v39, %v5201_v7 }
  0xc4   : > { %vm4372_vm4 = vmpackc.low %vm816_vm9, %vm814_vm8  ;;  %vm1100_vm9 = vcmp.eq.s32.totalorder %v5538_v39, %v5198_v6 }
  0xc5   : > { %4353 = vmatpush1.bf16.msk.msra.mxu1 %vm4352_vm14, %v4926_v14  ;;  %4373 = vmatpush1.bf16.msk.msra.mxu0 %vm4372_vm4, %v4926_v14  ;;  %vm4374_vm7 = vmpackc.low %vm1098_vm11, %vm1096_vm10  ;;  %vm1180_vm10 = vcmp.eq.s32.totalorder %v5554_v40, %v5198_v6  ;;  %vm1182_vm11 = vcmp.eq.s32.totalorder %v5554_v40, %v5201_v7  ;;  %vm1101_vm4 = vcmp.eq.s32.totalorder %v5562_v41, %v5201_v7 }
  0xc6   : > { %4375 = vmatprep.subr.msk.bf16.mxu0 %vm4374_vm7, %v4926_v14  ;;  %vm4398_vm8 = vmpackc.low %vm1178_vm0, %vm1176_vm15  ;;  %vm1099_vm0 = vcmp.eq.s32.totalorder %v5562_v41, %v5198_v6  ;;  %vm1181_vm7 = vcmp.eq.s32.totalorder %v5577_v42, %v5201_v7 }
  0xc7   : > { %4399 = vmatprep.subr.msk.bf16.mxu1 %vm4398_vm8, %v4926_v14  ;;  %vm4376_vm14 = vmpackc.low %vm1097_vm2, %vm1095_vm1  ;;  %vm1179_vm2 = vcmp.eq.s32.totalorder %v5577_v42, %v5198_v6  ;;  %vm1106_vm8 = vcmp.eq.s32.totalorder %v5538_v39, %v5242_v16 }
  0xc8   : > { %3655 = vmatmul.mubr.msk.f32.vlgmr.msra.gmra.mrb[8].mxu1 %vm452_vm13, %v5392_v30  ;;  %3679 = vmatmul.mubr.msk.f32.vlgmr.msra.gmra.mrb[8].mxu0 %vm554_vm3, %v5367_v28  ;;  %vm4400_vm15 = vmpackc.low %vm1177_vm6, %vm1175_vm5  ;;  %vm1104_vm6 = vcmp.eq.s32.totalorder %v5538_v39, %v5239_v15 }
  0xc9   : > { %4377 = vmatpush1.bf16.msk.msra.mxu0 %vm4376_vm14, %v4926_v14  ;;  %4401 = vmatpush1.bf16.msk.msra.mxu1 %vm4400_vm15, %v4926_v14  ;;  %vm4378_vm1 = vmpackc.low %vm1102_vm12, %vm1100_vm9  ;;  %vm1184_vm12 = vcmp.eq.s32.totalorder %v5554_v40, %v5239_v15  ;;  %vm1186_vm14 = vcmp.eq.s32.totalorder %v5554_v40, %v5242_v16  ;;  %vm1105_vm15 = vcmp.eq.s32.totalorder %v5562_v41, %v5242_v16 }
  0xca   : > { %928 = vmatprep.mubr.f32.mxu1 %v4925_v1  ;;  %1017 = vmatprep.mubr.f32.mxu0 %v4925_v1  ;;  %vm4402_vm5 = vmpackc.low %vm1182_vm11, %vm1180_vm10  ;;  %vm1103_vm11 = vcmp.eq.s32.totalorder %v5562_v41, %v5239_v15 }
  0xcb   : > { %4379 = vmatprep.subr.msk.bf16.mxu0 %vm4378_vm1, %v4926_v14  ;;  %4403 = vmatprep.subr.msk.bf16.mxu1 %vm4402_vm5, %v4926_v14  ;;  %vm4380_vm9 = vmpackc.low %vm1101_vm4, %vm1099_vm0  ;;  %vm1183_vm4 = vcmp.eq.s32.totalorder %v5577_v42, %v5239_v15  ;;  %vm1185_vm1 = vcmp.eq.s32.totalorder %v5577_v42, %v5242_v16  ;;  %vm1110_vm5 = vcmp.eq.s32.totalorder %v5538_v39, %v5268_v18 }
  0xcc   : > { %3656 = vmatmul.mubr.msk.f32.gmra.mrb[10].mxu1 %vm452_vm13, %v5425_v32  ;;  %3680 = vmatmul.mubr.msk.f32.gmra.mrb[10].mxu0 %vm554_vm3, %v5404_v31  ;;  %vm4404_vm10 = vmpackc.low %vm1181_vm7, %vm1179_vm2  ;;  %vm1108_vm7 = vcmp.eq.s32.totalorder %v5538_v39, %v5265_v17 }
  0xcd   : > { %4381 = vmatpush1.bf16.msk.msra.mxu0 %vm4380_vm9, %v4926_v14  ;;  %4405 = vmatpush1.bf16.msk.msra.mxu1 %vm4404_vm10, %v4926_v14  ;;  %vm4382_vm0 = vmpackc.low %vm1106_vm8, %vm1104_vm6  ;;  %vm1188_vm8 = vcmp.eq.s32.totalorder %v5554_v40, %v5265_v17  ;;  %vm1190_vm9 = vcmp.eq.s32.totalorder %v5554_v40, %v5268_v18  ;;  %vm1109_vm10 = vcmp.eq.s32.totalorder %v5562_v41, %v5268_v18 }
  0xce   : > { %934 = vmatprep.mubr.f32.mxu1 %v4925_v1  ;;  %1023 = vmatprep.mubr.f32.mxu0 %v4925_v1  ;;  %vm4406_vm2 = vmpackc.low %vm1186_vm14, %vm1184_vm12  ;;  %vm1107_vm14 = vcmp.eq.s32.totalorder %v5562_v41, %v5265_v17 }
  0xcf   : > { %4383 = vmatprep.subr.msk.bf16.mxu0 %vm4382_vm0, %v4926_v14  ;;  %4407 = vmatprep.subr.msk.bf16.mxu1 %vm4406_vm2, %v4926_v14  ;;  %vm4384_vm6 = vmpackc.low %vm1105_vm15, %vm1103_vm11  ;;  %vm1187_vm15 = vcmp.eq.s32.totalorder %v5577_v42, %v5265_v17  ;;  %vm1189_vm0 = vcmp.eq.s32.totalorder %v5577_v42, %v5268_v18  ;;  %vm1114_vm2 = vcmp.eq.s32.totalorder %v5538_v39, %v5294_v20 }
  0xd0   : > { %3657 = vmatmul.mubr.msk.f32.gmra.mrb[12].mxu1 %vm452_vm13, %v5464_v34  ;;  %3681 = vmatmul.mubr.msk.f32.gmra.mrb[12].mxu0 %vm554_vm3, %v5442_v33  ;;  %vm4408_vm12 = vmpackc.low %vm1185_vm1, %vm1183_vm4  ;;  %vm1112_vm1 = vcmp.eq.s32.totalorder %v5538_v39, %v5291_v19 }
  0xd1   : > { %4385 = vmatpush1.bf16.msk.msra.mxu0 %vm4384_vm6, %v4926_v14  ;;  %4409 = vmatpush1.bf16.msk.msra.mxu1 %vm4408_vm12, %v4926_v14  ;;  %vm4386_vm11 = vmpackc.low %vm1110_vm5, %vm1108_vm7  ;;  %vm1192_vm5 = vcmp.eq.s32.totalorder %v5554_v40, %v5291_v19  ;;  %vm1194_vm6 = vcmp.eq.s32.totalorder %v5554_v40, %v5294_v20  ;;  %vm1113_vm12 = vcmp.eq.s32.totalorder %v5562_v41, %v5294_v20 }
  0xd2   : > { %940 = vmatprep.mubr.f32.mxu1 %v4925_v1  ;;  %1029 = vmatprep.mubr.f32.mxu0 %v4925_v1  ;;  %vm4410_vm4 = vmpackc.low %vm1190_vm9, %vm1188_vm8  ;;  %vm1111_vm9 = vcmp.eq.s32.totalorder %v5562_v41, %v5291_v19 }
  0xd3   : > { %4387 = vmatprep.subr.msk.bf16.mxu0 %vm4386_vm11, %v4926_v14  ;;  %4411 = vmatprep.subr.msk.bf16.mxu1 %vm4410_vm4, %v4926_v14  ;;  %vm4388_vm7 = vmpackc.low %vm1109_vm10, %vm1107_vm14  ;;  %vm1191_vm10 = vcmp.eq.s32.totalorder %v5577_v42, %v5291_v19  ;;  %vm1193_vm11 = vcmp.eq.s32.totalorder %v5577_v42, %v5294_v20  ;;  %vm1118_vm4 = vcmp.eq.s32.totalorder %v5538_v39, %v5321_v23 }
  0xd4   : > { %3658 = vmatmul.mubr.msk.f32.gmra.mrb[14].mxu1 %vm452_vm13, %v5504_v37  ;;  %3682 = vmatmul.mubr.msk.f32.gmra.mrb[14].mxu0 %vm554_vm3, %v5481_v35  ;;  %vm4412_vm8 = vmpackc.low %vm1189_vm0, %vm1187_vm15  ;;  %vm1116_vm0 = vcmp.eq.s32.totalorder %v5538_v39, %v5318_v22 }
  0xd5   : > { %4389 = vmatpush1.bf16.msk.msra.mxu0 %vm4388_vm7, %v4926_v14  ;;  %4413 = vmatpush1.bf16.msk.msra.mxu1 %vm4412_vm8, %v4926_v14  ;;  %vm4390_vm14 = vmpackc.low %vm1114_vm2, %vm1112_vm1  ;;  %vm1473_vm2 = vcmp.eq.s32.totalorder %v5704_v44, %v5186_v2  ;;  %vm1475_vm7 = vcmp.eq.s32.totalorder %v5704_v44, %v5195_v5  ;;  %vm1117_vm8 = vcmp.eq.s32.totalorder %v5562_v41, %v5321_v23 }
  0xd6   : > { %4391 = vmatprep.subr.msk.bf16.mxu0 %vm4390_vm14, %v4926_v14  ;;  %vm4414_vm15 = vmpackc.low %vm1194_vm6, %vm1192_vm5  ;;  %1388 = vmatprep.mubr.f32.mxu1 %v4925_v1  ;;  %vm1115_vm6 = vcmp.eq.s32.totalorder %v5562_v41, %v5318_v22  ;;  %vm1474_vm14 = vcmp.eq.s32.totalorder %v5731_v46, %v5195_v5 }
  0xd7   : > { %4415 = vmatprep.subr.msk.bf16.mxu1 %vm4414_vm15, %v4926_v14  ;;  %vm4392_vm1 = vmpackc.low %vm1113_vm12, %vm1111_vm9  ;;  %1299 = vmatprep.mubr.f32.mxu0 %v4925_v1  ;;  %vm1472_vm12 = vcmp.eq.s32.totalorder %v5731_v46, %v5186_v2  ;;  %vm1479_vm15 = vcmp.eq.s32.totalorder %v5704_v44, %v5201_v7 }
  0xd8   : > { %vm4416_vm5 = vmpackc.low %vm1193_vm11, %vm1191_vm10  ;;  %vm1477_vm11 = vcmp.eq.s32.totalorder %v5704_v44, %v5198_v6 }
  0xd9   : > { %4393 = vmatpush1.bf16.msk.msra.mxu0 %vm4392_vm1, %v4926_v14  ;;  %4417 = vmatpush1.bf16.msk.msra.mxu1 %vm4416_vm5, %v4926_v14  ;;  %vm4394_vm9 = vmpackc.low %vm1118_vm4, %vm1116_vm0  ;;  %vm1553_vm4 = vcmp.eq.s32.totalorder %v5755_v47, %v5186_v2  ;;  %vm1555_vm1 = vcmp.eq.s32.totalorder %v5755_v47, %v5195_v5 }
  0xda   : > { %4395 = vmatprep.subr.msk.bf16.mxu0 %vm4394_vm9, %v4926_v14  ;;  %vm4418_vm10 = vmpackc.low %vm1475_vm7, %vm1473_vm2  ;;  %vm1476_vm2 = vcmp.eq.s32.totalorder %v5731_v46, %v5198_v6  ;;  %vm1478_vm7 = vcmp.eq.s32.totalorder %v5731_v46, %v5201_v7  ;;  %vm1554_vm9 = vcmp.eq.s32.totalorder %v5768_v48, %v5195_v5 }
  0xdb   : > { %4419 = vmatprep.subr.msk.bf16.mxu1 %vm4418_vm10, %v4926_v14  ;;  %vm4396_vm0 = vmpackc.low %vm1117_vm8, %vm1115_vm6  ;;  %vm1552_vm8 = vcmp.eq.s32.totalorder %v5768_v48, %v5186_v2  ;;  %vm1483_vm10 = vcmp.eq.s32.totalorder %v5704_v44, %v5242_v16 }
  0xdc   : > { %3778 = vmatmul.mubr.msk.f32.vlgmr.msra.gmra.mrb[16].mxu1 %vm554_vm3, %v5367_v28  ;;  %vm4420_vm5 = vmpackc.low %vm1474_vm14, %vm1472_vm12  ;;  %vm1481_vm14 = vcmp.eq.s32.totalorder %v5704_v44, %v5239_v15 }
  0xdd   : > { %4397 = vmatpush1.bf16.msk.msra.mxu0 %vm4396_vm0, %v4926_v14  ;;  %4421 = vmatpush1.bf16.msk.msra.mxu1 %vm4420_vm5, %v4926_v14  ;;  %vm4422_vm6 = vmpackc.low %vm1479_vm15, %vm1477_vm11  ;;  %vm1557_vm15 = vcmp.eq.s32.totalorder %v5755_v47, %v5198_v6  ;;  %vm1559_vm0 = vcmp.eq.s32.totalorder %v5755_v47, %v5201_v7  ;;  %vm1482_vm5 = vcmp.eq.s32.totalorder %v5731_v46, %v5242_v16 }
  0xde   : > { %4423 = vmatprep.subr.msk.bf16.mxu1 %vm4422_vm6, %v4926_v14  ;;  %vm4442_vm12 = vmpackc.low %vm1555_vm1, %vm1553_vm4  ;;  %1394 = vmatprep.mubr.f32.mxu1 %v4925_v1  ;;  %vm1480_vm1 = vcmp.eq.s32.totalorder %v5731_v46, %v5239_v15  ;;  %vm1558_vm6 = vcmp.eq.s32.totalorder %v5768_v48, %v5201_v7 }
  0xdf   : > { %4443 = vmatprep.subr.msk.bf16.mxu0 %vm4442_vm12, %v4926_v14  ;;  %vm4424_vm11 = vmpackc.low %vm1478_vm7, %vm1476_vm2  ;;  %vm1556_vm7 = vcmp.eq.s32.totalorder %v5768_v48, %v5198_v6  ;;  %vm1487_vm12 = vcmp.eq.s32.totalorder %v5704_v44, %v5268_v18 }
  0xe0   : > { %3754 = vmatmul.mubr.msk.f32.vlgmr.msra.gmra.mrb[16].mxu0 %vm452_vm13, %v5392_v30  ;;  %vm4444_vm4 = vmpackc.low %vm1554_vm9, %vm1552_vm8  ;;  %3779 = vmatmul.mubr.msk.f32.gmra.mrb[18].mxu1 %vm554_vm3, %v5404_v31  ;;  %vm1485_vm9 = vcmp.eq.s32.totalorder %v5704_v44, %v5265_v17 }
  0xe1   : > { %4425 = vmatpush1.bf16.msk.msra.mxu1 %vm4424_vm11, %v4926_v14  ;;  %4445 = vmatpush1.bf16.msk.msra.mxu0 %vm4444_vm4, %v4926_v14  ;;  %vm4426_vm2 = vmpackc.low %vm1483_vm10, %vm1481_vm14  ;;  %vm1561_vm10 = vcmp.eq.s32.totalorder %v5755_v47, %v5239_v15  ;;  %vm1563_vm11 = vcmp.eq.s32.totalorder %v5755_v47, %v5242_v16  ;;  %vm1486_vm4 = vcmp.eq.s32.totalorder %v5731_v46, %v5268_v18 }
  0xe2   : > { %1305 = vmatprep.mubr.f32.mxu0 %v4925_v1  ;;  %4427 = vmatprep.subr.msk.bf16.mxu1 %vm4426_vm2, %v4926_v14  ;;  %vm4446_vm8 = vmpackc.low %vm1559_vm0, %vm1557_vm15  ;;  %vm1484_vm0 = vcmp.eq.s32.totalorder %v5731_v46, %v5265_v17  ;;  %vm1562_vm2 = vcmp.eq.s32.totalorder %v5768_v48, %v5242_v16 }
  0xe3   : > { %4447 = vmatprep.subr.msk.bf16.mxu0 %vm4446_vm8, %v4926_v14  ;;  %vm4428_vm14 = vmpackc.low %vm1482_vm5, %vm1480_vm1  ;;  %1400 = vmatprep.mubr.f32.mxu1 %v4925_v1  ;;  %vm1560_vm5 = vcmp.eq.s32.totalorder %v5768_v48, %v5239_v15  ;;  %vm1491_vm8 = vcmp.eq.s32.totalorder %v5704_v44, %v5294_v20 }
  0xe4   : > { %3755 = vmatmul.mubr.msk.f32.gmra.mrb[18].mxu0 %vm452_vm13, %v5425_v32  ;;  %vm4448_vm15 = vmpackc.low %vm1558_vm6, %vm1556_vm7  ;;  %3780 = vmatmul.mubr.msk.f32.gmra.mrb[20].mxu1 %vm554_vm3, %v5442_v33  ;;  %vm1489_vm6 = vcmp.eq.s32.totalorder %v5704_v44, %v5291_v19 }
  0xe5   : > { %4429 = vmatpush1.bf16.msk.msra.mxu1 %vm4428_vm14, %v4926_v14  ;;  %4449 = vmatpush1.bf16.msk.msra.mxu0 %vm4448_vm15, %v4926_v14  ;;  %vm4430_vm1 = vmpackc.low %vm1487_vm12, %vm1485_vm9  ;;  %vm1565_vm12 = vcmp.eq.s32.totalorder %v5755_v47, %v5265_v17  ;;  %vm1567_vm14 = vcmp.eq.s32.totalorder %v5755_v47, %v5268_v18  ;;  %vm1490_vm15 = vcmp.eq.s32.totalorder %v5731_v46, %v5294_v20 }
  0xe6   : > { %1311 = vmatprep.mubr.f32.mxu0 %v4925_v1  ;;  %4431 = vmatprep.subr.msk.bf16.mxu1 %vm4430_vm1, %v4926_v14  ;;  %vm4450_vm7 = vmpackc.low %vm1563_vm11, %vm1561_vm10  ;;  %vm1488_vm11 = vcmp.eq.s32.totalorder %v5731_v46, %v5291_v19  ;;  %vm1566_vm1 = vcmp.eq.s32.totalorder %v5768_v48, %v5268_v18 }
  0xe7   : > { %4451 = vmatprep.subr.msk.bf16.mxu0 %vm4450_vm7, %v4926_v14  ;;  %vm4432_vm9 = vmpackc.low %vm1486_vm4, %vm1484_vm0  ;;  %1406 = vmatprep.mubr.f32.mxu1 %v4925_v1  ;;  %vm1564_vm4 = vcmp.eq.s32.totalorder %v5768_v48, %v5265_v17  ;;  %vm1495_vm7 = vcmp.eq.s32.totalorder %v5704_v44, %v5321_v23 }
  0xe8   : > { %3756 = vmatmul.mubr.msk.f32.gmra.mrb[20].mxu0 %vm452_vm13, %v5464_v34  ;;  %vm4452_vm10 = vmpackc.low %vm1562_vm2, %vm1560_vm5  ;;  %3781 = vmatmul.mubr.msk.f32.gmra.mrb[22].mxu1 %vm554_vm3, %v5481_v35  ;;  %vm1493_vm2 = vcmp.eq.s32.totalorder %v5704_v44, %v5318_v22 }
  0xe9   : > { %4433 = vmatpush1.bf16.msk.msra.mxu1 %vm4432_vm9, %v4926_v14  ;;  %4453 = vmatpush1.bf16.msk.msra.mxu0 %vm4452_vm10, %v4926_v14  ;;  %vm4434_vm0 = vmpackc.low %vm1491_vm8, %vm1489_vm6  ;;  %vm1569_vm8 = vcmp.eq.s32.totalorder %v5755_v47, %v5291_v19  ;;  %vm1571_vm9 = vcmp.eq.s32.totalorder %v5755_v47, %v5294_v20  ;;  %vm1494_vm10 = vcmp.eq.s32.totalorder %v5731_v46, %v5321_v23 }
  0xea   : > { %1317 = vmatprep.mubr.f32.mxu0 %v4925_v1  ;;  %4435 = vmatprep.subr.msk.bf16.mxu1 %vm4434_vm0, %v4926_v14  ;;  %vm4454_vm5 = vmpackc.low %vm1567_vm14, %vm1565_vm12  ;;  %vm1492_vm14 = vcmp.eq.s32.totalorder %v5731_v46, %v5318_v22  ;;  %vm1570_vm0 = vcmp.eq.s32.totalorder %v5768_v48, %v5294_v20 }
  0xeb   : > { %4455 = vmatprep.subr.msk.bf16.mxu0 %vm4454_vm5, %v4926_v14  ;;  %vm4436_vm6 = vmpackc.low %vm1490_vm15, %vm1488_vm11  ;;  %1676 = vmatprep.mubr.f32.mxu1 %v4925_v1  ;;  %vm1568_vm15 = vcmp.eq.s32.totalorder %v5768_v48, %v5291_v19  ;;  %vm1852_vm5 = vcmp.eq.s32.totalorder %v5890_v51, %v5195_v5 }
  0xec   : > { %3757 = vmatmul.mubr.msk.f32.gmra.mrb[22].mxu0 %vm452_vm13, %v5504_v37  ;;  %vm4456_vm12 = vmpackc.low %vm1566_vm1, %vm1564_vm4  ;;  %vm1850_vm1 = vcmp.eq.s32.totalorder %v5890_v51, %v5186_v2 }
  0xed   : > { %4437 = vmatpush1.bf16.msk.msra.mxu1 %vm4436_vm6, %v4926_v14  ;;  %4457 = vmatpush1.bf16.msk.msra.mxu0 %vm4456_vm12, %v4926_v14  ;;  %vm4438_vm11 = vmpackc.low %vm1495_vm7, %vm1493_vm2  ;;  %vm1930_vm7 = vcmp.eq.s32.totalorder %v5902_v52, %v5186_v2  ;;  %vm1932_vm6 = vcmp.eq.s32.totalorder %v5902_v52, %v5195_v5  ;;  %vm1851_vm12 = vcmp.eq.s32.totalorder %v5914_v53, %v5195_v5 }
  0xee   : > { %4439 = vmatprep.subr.msk.bf16.mxu1 %vm4438_vm11, %v4926_v14  ;;  %vm4458_vm4 = vmpackc.low %vm1571_vm9, %vm1569_vm8  ;;  %1765 = vmatprep.mubr.f32.mxu0 %v4925_v1  ;;  %vm1849_vm9 = vcmp.eq.s32.totalorder %v5914_v53, %v5186_v2 }
  0xef   : > { %4459 = vmatprep.subr.msk.bf16.mxu0 %vm4458_vm4, %v4926_v14  ;;  %vm4440_vm2 = vmpackc.low %vm1494_vm10, %vm1492_vm14  ;;  %vm1929_vm14 = vcmp.eq.s32.totalorder %v5929_v54, %v5186_v2  ;;  %vm1931_vm10 = vcmp.eq.s32.totalorder %v5929_v54, %v5195_v5  ;;  %vm1856_vm4 = vcmp.eq.s32.totalorder %v5890_v51, %v5201_v7 }
  0xf0   : > { %vm4460_vm8 = vmpackc.low %vm1570_vm0, %vm1568_vm15  ;;  %vm1854_vm0 = vcmp.eq.s32.totalorder %v5890_v51, %v5198_v6 }
  0xf1   : > { %4441 = vmatpush1.bf16.msk.msra.mxu1 %vm4440_vm2, %v4926_v14  ;;  %4461 = vmatpush1.bf16.msk.msra.mxu0 %vm4460_vm8, %v4926_v14  ;;  %vm4462_vm11 = vmpackc.low %vm1852_vm5, %vm1850_vm1  ;;  %vm1934_vm1 = vcmp.eq.s32.totalorder %v5902_v52, %v5198_v6  ;;  %vm1936_vm5 = vcmp.eq.s32.totalorder %v5902_v52, %v5201_v7  ;;  %vm1855_vm8 = vcmp.eq.s32.totalorder %v5914_v53, %v5201_v7 }
  0xf2   : > { %4463 = vmatprep.subr.msk.bf16.mxu0 %vm4462_vm11, %v4926_v14  ;;  %vm4486_vm15 = vmpackc.low %vm1932_vm6, %vm1930_vm7  ;;  %vm1853_vm6 = vcmp.eq.s32.totalorder %v5914_v53, %v5198_v6  ;;  %vm1935_vm11 = vcmp.eq.s32.totalorder %v5929_v54, %v5201_v7 }
  0xf3   : > { %4487 = vmatprep.subr.msk.bf16.mxu1 %vm4486_vm15, %v4926_v14  ;;  %vm4464_vm2 = vmpackc.low %vm1851_vm12, %vm1849_vm9  ;;  %vm1933_vm12 = vcmp.eq.s32.totalorder %v5929_v54, %v5198_v6  ;;  %vm1860_vm15 = vcmp.eq.s32.totalorder %v5890_v51, %v5242_v16 }
  0xf4   : > { %3853 = vmatmul.mubr.msk.f32.vlgmr.msra.gmra.mrb[24].mxu1 %vm452_vm13, %v5392_v30  ;;  %3877 = vmatmul.mubr.msk.f32.vlgmr.msra.gmra.mrb[24].mxu0 %vm554_vm3, %v5367_v28  ;;  %vm4488_vm7 = vmpackc.low %vm1931_vm10, %vm1929_vm14  ;;  %vm1858_vm10 = vcmp.eq.s32.totalorder %v5890_v51, %v5239_v15 }
  0xf5   : > { %4465 = vmatpush1.bf16.msk.msra.mxu0 %vm4464_vm2, %v4926_v14  ;;  %4489 = vmatpush1.bf16.msk.msra.mxu1 %vm4488_vm7, %v4926_v14  ;;  %vm4466_vm9 = vmpackc.low %vm1856_vm4, %vm1854_vm0  ;;  %vm1938_vm4 = vcmp.eq.s32.totalorder %v5902_v52, %v5239_v15  ;;  %vm1940_vm2 = vcmp.eq.s32.totalorder %v5902_v52, %v5242_v16  ;;  %vm1859_vm7 = vcmp.eq.s32.totalorder %v5914_v53, %v5242_v16 }
  0xf6   : > { %1682 = vmatprep.mubr.f32.mxu1 %v4925_v1  ;;  %1771 = vmatprep.mubr.f32.mxu0 %v4925_v1  ;;  %vm4490_vm14 = vmpackc.low %vm1936_vm5, %vm1934_vm1  ;;  %vm1857_vm5 = vcmp.eq.s32.totalorder %v5914_v53, %v5239_v15 }
  0xf7   : > { %4467 = vmatprep.subr.msk.bf16.mxu0 %vm4466_vm9, %v4926_v14  ;;  %4491 = vmatprep.subr.msk.bf16.mxu1 %vm4490_vm14, %v4926_v14  ;;  %vm4468_vm0 = vmpackc.low %vm1855_vm8, %vm1853_vm6  ;;  %vm1937_vm8 = vcmp.eq.s32.totalorder %v5929_v54, %v5239_v15  ;;  %vm1939_vm9 = vcmp.eq.s32.totalorder %v5929_v54, %v5242_v16  ;;  %vm1864_vm14 = vcmp.eq.s32.totalorder %v5890_v51, %v5268_v18 }
  0xf8   : > { %3854 = vmatmul.mubr.msk.f32.gmra.mrb[26].mxu1 %vm452_vm13, %v5425_v32  ;;  %3878 = vmatmul.mubr.msk.f32.gmra.mrb[26].mxu0 %vm554_vm3, %v5404_v31  ;;  %vm4492_vm1 = vmpackc.low %vm1935_vm11, %vm1933_vm12  ;;  %vm1862_vm11 = vcmp.eq.s32.totalorder %v5890_v51, %v5265_v17 }
  0xf9   : > { %4469 = vmatpush1.bf16.msk.msra.mxu0 %vm4468_vm0, %v4926_v14  ;;  %4493 = vmatpush1.bf16.msk.msra.mxu1 %vm4492_vm1, %v4926_v14  ;;  %vm4470_vm6 = vmpackc.low %vm1860_vm15, %vm1858_vm10  ;;  %vm1942_vm15 = vcmp.eq.s32.totalorder %v5902_v52, %v5265_v17  ;;  %vm1944_vm0 = vcmp.eq.s32.totalorder %v5902_v52, %v5268_v18  ;;  %vm1863_vm1 = vcmp.eq.s32.totalorder %v5914_v53, %v5268_v18 }
  0xfa   : > { %1688 = vmatprep.mubr.f32.mxu1 %v4925_v1  ;;  %1777 = vmatprep.mubr.f32.mxu0 %v4925_v1  ;;  %vm4494_vm12 = vmpackc.low %vm1940_vm2, %vm1938_vm4  ;;  %vm1861_vm2 = vcmp.eq.s32.totalorder %v5914_v53, %v5265_v17 }
  0xfb   : > { %4471 = vmatprep.subr.msk.bf16.mxu0 %vm4470_vm6, %v4926_v14  ;;  %4495 = vmatprep.subr.msk.bf16.mxu1 %vm4494_vm12, %v4926_v14  ;;  %vm4472_vm10 = vmpackc.low %vm1859_vm7, %vm1857_vm5  ;;  %vm1941_vm7 = vcmp.eq.s32.totalorder %v5929_v54, %v5265_v17  ;;  %vm1943_vm6 = vcmp.eq.s32.totalorder %v5929_v54, %v5268_v18  ;;  %vm1868_vm12 = vcmp.eq.s32.totalorder %v5890_v51, %v5294_v20 }
  0xfc   : > { %3855 = vmatmul.mubr.msk.f32.gmra.mrb[28].mxu1 %vm452_vm13, %v5464_v34  ;;  %3879 = vmatmul.mubr.msk.f32.gmra.mrb[28].mxu0 %vm554_vm3, %v5442_v33  ;;  %vm4496_vm4 = vmpackc.low %vm1939_vm9, %vm1937_vm8  ;;  %vm1866_vm9 = vcmp.eq.s32.totalorder %v5890_v51, %v5291_v19 }
  0xfd   : > { %4473 = vmatpush1.bf16.msk.msra.mxu0 %vm4472_vm10, %v4926_v14  ;;  %4497 = vmatpush1.bf16.msk.msra.mxu1 %vm4496_vm4, %v4926_v14  ;;  %vm4474_vm5 = vmpackc.low %vm1864_vm14, %vm1862_vm11  ;;  %vm1946_vm14 = vcmp.eq.s32.totalorder %v5902_v52, %v5291_v19  ;;  %vm1948_vm10 = vcmp.eq.s32.totalorder %v5902_v52, %v5294_v20  ;;  %vm1867_vm4 = vcmp.eq.s32.totalorder %v5914_v53, %v5294_v20 }
  0xfe   : > { %1694 = vmatprep.mubr.f32.mxu1 %v4925_v1  ;;  %1783 = vmatprep.mubr.f32.mxu0 %v4925_v1  ;;  %vm4498_vm8 = vmpackc.low %vm1944_vm0, %vm1942_vm15  ;;  %vm1865_vm0 = vcmp.eq.s32.totalorder %v5914_v53, %v5291_v19 }
  0xff   : > { %4475 = vmatprep.subr.msk.bf16.mxu0 %vm4474_vm5, %v4926_v14  ;;  %4499 = vmatprep.subr.msk.bf16.mxu1 %vm4498_vm8, %v4926_v14  ;;  %vm4476_vm11 = vmpackc.low %vm1863_vm1, %vm1861_vm2  ;;  %vm1945_vm1 = vcmp.eq.s32.totalorder %v5929_v54, %v5291_v19  ;;  %vm1947_vm5 = vcmp.eq.s32.totalorder %v5929_v54, %v5294_v20  ;;  %vm1872_vm8 = vcmp.eq.s32.totalorder %v5890_v51, %v5321_v23 }
 0x100   : > { %3856 = vmatmul.mubr.msk.f32.gmra.mrb[30].mxu1 %vm452_vm13, %v5504_v37  ;;  %3880 = vmatmul.mubr.msk.f32.gmra.mrb[30].mxu0 %vm554_vm3, %v5481_v35  ;;  %vm4500_vm15 = vmpackc.low %vm1943_vm6, %vm1941_vm7  ;;  %vm1870_vm6 = vcmp.eq.s32.totalorder %v5890_v51, %v5318_v22 }
 0x101   : > { %4477 = vmatpush1.bf16.msk.msra.mxu0 %vm4476_vm11, %v4926_v14  ;;  %4501 = vmatpush1.bf16.msk.msra.mxu1 %vm4500_vm15, %v4926_v14  ;;  %vm4478_vm2 = vmpackc.low %vm1868_vm12, %vm1866_vm9  ;;  %vm2227_vm12 = vcmp.eq.s32.totalorder %v6060_v56, %v5186_v2  ;;  %vm2229_vm11 = vcmp.eq.s32.totalorder %v6060_v56, %v5195_v5  ;;  %vm1871_vm15 = vcmp.eq.s32.totalorder %v5914_v53, %v5321_v23 }
 0x102   : > { %4479 = vmatprep.subr.msk.bf16.mxu0 %vm4478_vm2, %v4926_v14  ;;  %vm4502_vm7 = vmpackc.low %vm1948_vm10, %vm1946_vm14  ;;  %2142 = vmatprep.mubr.f32.mxu1 %v4925_v1  ;;  %vm1869_vm10 = vcmp.eq.s32.totalorder %v5914_v53, %v5318_v22  ;;  %vm2228_vm2 = vcmp.eq.s32.totalorder %v6087_v58, %v5195_v5  ;;  %v4927_v53 = vmov 1966171168  }
 0x103   : > { %4503 = vmatprep.subr.msk.bf16.mxu1 %vm4502_vm7, %v4926_v14  ;;  %vm4480_vm9 = vmpackc.low %vm1867_vm4, %vm1865_vm0  ;;  %2053 = vmatprep.mubr.f32.mxu0 %v4925_v1  ;;  %vm2226_vm4 = vcmp.eq.s32.totalorder %v6087_v58, %v5186_v2  ;;  %vm2233_vm7 = vcmp.eq.s32.totalorder %v6060_v56, %v5201_v7  ;;  %v686_v54 = vunpack.c.l.s4 %v4927_v53 }
 0x104   : > { %vm4504_vm14 = vmpackc.low %vm1947_vm5, %vm1945_vm1  ;;  %vm2231_vm5 = vcmp.eq.s32.totalorder %v6060_v56, %v5198_v6 }
 0x105   : > { %4481 = vmatpush1.bf16.msk.msra.mxu0 %vm4480_vm9, %v4926_v14  ;;  %4505 = vmatpush1.bf16.msk.msra.mxu1 %vm4504_vm14, %v4926_v14  ;;  %vm4482_vm0 = vmpackc.low %vm1872_vm8, %vm1870_vm6  ;;  %vm2307_vm8 = vcmp.eq.s32.totalorder %v6111_v59, %v5186_v2  ;;  %vm2309_vm9 = vcmp.eq.s32.totalorder %v6111_v59, %v5195_v5 }
 0x106   : > { %4483 = vmatprep.subr.msk.bf16.mxu0 %vm4482_vm0, %v4926_v14  ;;  %vm4506_vm1 = vmpackc.low %vm2229_vm11, %vm2227_vm12  ;;  %vm2230_vm12 = vcmp.eq.s32.totalorder %v6087_v58, %v5198_v6  ;;  %vm2232_vm11 = vcmp.eq.s32.totalorder %v6087_v58, %v5201_v7  ;;  %vm2308_vm0 = vcmp.eq.s32.totalorder %v6124_v60, %v5195_v5 }
 0x107   : > { %4507 = vmatprep.subr.msk.bf16.mxu1 %vm4506_vm1, %v4926_v14  ;;  %vm4484_vm6 = vmpackc.low %vm1871_vm15, %vm1869_vm10  ;;  %vm2306_vm15 = vcmp.eq.s32.totalorder %v6124_v60, %v5186_v2  ;;  %vm2237_vm1 = vcmp.eq.s32.totalorder %v6060_v56, %v5242_v16 }
 0x108   : > { %3976 = vmatmul.mubr.msk.f32.vlgmr.msra.gmra.mrb[32].mxu1 %vm554_vm3, %v5367_v28  ;;  %vm4508_vm14 = vmpackc.low %vm2228_vm2, %vm2226_vm4  ;;  %vm2235_vm2 = vcmp.eq.s32.totalorder %v6060_v56, %v5239_v15  ;;  %v6469_v28 = vld [vmem:[#allocation7 + $0x18] sm:$0xff] }
 0x109   : > { %4485 = vmatpush1.bf16.msk.msra.mxu0 %vm4484_vm6, %v4926_v14  ;;  %4509 = vmatpush1.bf16.msk.msra.mxu1 %vm4508_vm14, %v4926_v14  ;;  %vm4510_vm10 = vmpackc.low %vm2233_vm7, %vm2231_vm5  ;;  %vm2311_vm7 = vcmp.eq.s32.totalorder %v6111_v59, %v5198_v6  ;;  %vm2313_vm6 = vcmp.eq.s32.totalorder %v6111_v59, %v5201_v7  ;;  %vm2236_vm14 = vcmp.eq.s32.totalorder %v6087_v58, %v5242_v16 }
 0x10a   : > { %4511 = vmatprep.subr.msk.bf16.mxu1 %vm4510_vm10, %v4926_v14  ;;  %vm4530_vm4 = vmpackc.low %vm2309_vm9, %vm2307_vm8  ;;  %2148 = vmatprep.mubr.f32.mxu1 %v4925_v1  ;;  %vm2234_vm9 = vcmp.eq.s32.totalorder %v6087_v58, %v5239_v15  ;;  %vm2312_vm10 = vcmp.eq.s32.totalorder %v6124_v60, %v5201_v7 }
 0x10b   : > { %4531 = vmatprep.subr.msk.bf16.mxu0 %vm4530_vm4, %v4926_v14  ;;  %vm4512_vm5 = vmpackc.low %vm2232_vm11, %vm2230_vm12  ;;  %vm2310_vm11 = vcmp.eq.s32.totalorder %v6124_v60, %v5198_v6  ;;  %vm2241_vm4 = vcmp.eq.s32.totalorder %v6060_v56, %v5268_v18 }
 0x10c   : > { %3952 = vmatmul.mubr.msk.f32.vlgmr.msra.gmra.mrb[32].mxu0 %vm452_vm13, %v5392_v30  ;;  %vm4532_vm8 = vmpackc.low %vm2308_vm0, %vm2306_vm15  ;;  %3977 = vmatmul.mubr.msk.f32.gmra.mrb[34].mxu1 %vm554_vm3, %v5404_v31  ;;  %vm2239_vm0 = vcmp.eq.s32.totalorder %v6060_v56, %v5265_v17  ;;  %v4180_v30 = vld [vmem:[%s5169_s7 + $0x7] ss:$8 sm:$0x3]  ;;  %v6501_v31 = vrot.slane %v4179_v26, %v5192_v4 }
 0x10d   : > { %4513 = vmatpush1.bf16.msk.msra.mxu1 %vm4512_vm5, %v4926_v14  ;;  %4533 = vmatpush1.bf16.msk.msra.mxu0 %vm4532_vm8, %v4926_v14  ;;  %vm4514_vm12 = vmpackc.low %vm2237_vm1, %vm2235_vm2  ;;  %vm2315_vm1 = vcmp.eq.s32.totalorder %v6111_v59, %v5239_v15  ;;  %vm2317_vm5 = vcmp.eq.s32.totalorder %v6111_v59, %v5242_v16  ;;  %vm2240_vm8 = vcmp.eq.s32.totalorder %v6087_v58, %v5268_v18 }
 0x10e   : > { %2059 = vmatprep.mubr.f32.mxu0 %v4925_v1  ;;  %4515 = vmatprep.subr.msk.bf16.mxu1 %vm4514_vm12, %v4926_v14  ;;  %vm4534_vm15 = vmpackc.low %vm2313_vm6, %vm2311_vm7  ;;  %vm2238_vm6 = vcmp.eq.s32.totalorder %v6087_v58, %v5265_v17  ;;  %vm2316_vm12 = vcmp.eq.s32.totalorder %v6124_v60, %v5242_v16 }
 0x10f   : > { %4535 = vmatprep.subr.msk.bf16.mxu0 %vm4534_vm15, %v4926_v14  ;;  %vm4516_vm2 = vmpackc.low %vm2236_vm14, %vm2234_vm9  ;;  %2154 = vmatprep.mubr.f32.mxu1 %v4925_v1  ;;  %vm2314_vm14 = vcmp.eq.s32.totalorder %v6124_v60, %v5239_v15  ;;  %vm2245_vm15 = vcmp.eq.s32.totalorder %v6060_v56, %v5294_v20 }
 0x110   : > { %3953 = vmatmul.mubr.msk.f32.gmra.mrb[34].mxu0 %vm452_vm13, %v5425_v32  ;;  %vm4536_vm7 = vmpackc.low %vm2312_vm10, %vm2310_vm11  ;;  %3978 = vmatmul.mubr.msk.f32.gmra.mrb[36].mxu1 %vm554_vm3, %v5442_v33  ;;  %vm2243_vm10 = vcmp.eq.s32.totalorder %v6060_v56, %v5291_v19  ;;  %v6525_v32 = vrot.slane %v4180_v30, %v5189_v3  ;;  %v6538_v3 = vrot.slane %v4180_v30, %v5192_v4 }
 0x111   : > { %4517 = vmatpush1.bf16.msk.msra.mxu1 %vm4516_vm2, %v4926_v14  ;;  %4537 = vmatpush1.bf16.msk.msra.mxu0 %vm4536_vm7, %v4926_v14  ;;  %vm4518_vm9 = vmpackc.low %vm2241_vm4, %vm2239_vm0  ;;  %vm2319_vm4 = vcmp.eq.s32.totalorder %v6111_v59, %v5265_v17  ;;  %vm2321_vm2 = vcmp.eq.s32.totalorder %v6111_v59, %v5268_v18  ;;  %vm2244_vm7 = vcmp.eq.s32.totalorder %v6087_v58, %v5294_v20 }
 0x112   : > { %2065 = vmatprep.mubr.f32.mxu0 %v4925_v1  ;;  %4519 = vmatprep.subr.msk.bf16.mxu1 %vm4518_vm9, %v4926_v14  ;;  %vm4538_vm11 = vmpackc.low %vm2317_vm5, %vm2315_vm1  ;;  %vm2242_vm5 = vcmp.eq.s32.totalorder %v6087_v58, %v5291_v19  ;;  %vm2320_vm9 = vcmp.eq.s32.totalorder %v6124_v60, %v5268_v18 }
 0x113   : > { %4539 = vmatprep.subr.msk.bf16.mxu0 %vm4538_vm11, %v4926_v14  ;;  %vm4520_vm0 = vmpackc.low %vm2240_vm8, %vm2238_vm6  ;;  %2160 = vmatprep.mubr.f32.mxu1 %v4925_v1  ;;  %vm2318_vm8 = vcmp.eq.s32.totalorder %v6124_v60, %v5265_v17  ;;  %vm2249_vm11 = vcmp.eq.s32.totalorder %v6060_v56, %v5321_v23 }
 0x114   : > { %3954 = vmatmul.mubr.msk.f32.gmra.mrb[36].mxu0 %vm452_vm13, %v5464_v34  ;;  %vm4540_vm1 = vmpackc.low %vm2316_vm12, %vm2314_vm14  ;;  %3979 = vmatmul.mubr.msk.f32.gmra.mrb[38].mxu1 %vm554_vm3, %v5481_v35  ;;  %vm2247_vm12 = vcmp.eq.s32.totalorder %v6060_v56, %v5318_v22 }
 0x115   : > { %4521 = vmatpush1.bf16.msk.msra.mxu1 %vm4520_vm0, %v4926_v14  ;;  %4541 = vmatpush1.bf16.msk.msra.mxu0 %vm4540_vm1, %v4926_v14  ;;  %vm4522_vm6 = vmpackc.low %vm2245_vm15, %vm2243_vm10  ;;  %vm2323_vm15 = vcmp.eq.s32.totalorder %v6111_v59, %v5291_v19  ;;  %vm2325_vm0 = vcmp.eq.s32.totalorder %v6111_v59, %v5294_v20  ;;  %vm2248_vm1 = vcmp.eq.s32.totalorder %v6087_v58, %v5321_v23 }
 0x116   : > { %2071 = vmatprep.mubr.f32.mxu0 %v4925_v1  ;;  %4523 = vmatprep.subr.msk.bf16.mxu1 %vm4522_vm6, %v4926_v14  ;;  %vm4542_vm14 = vmpackc.low %vm2321_vm2, %vm2319_vm4  ;;  %vm2246_vm2 = vcmp.eq.s32.totalorder %v6087_v58, %v5318_v22  ;;  %vm2324_vm6 = vcmp.eq.s32.totalorder %v6124_v60, %v5294_v20 }
 0x117   : > { %4543 = vmatprep.subr.msk.bf16.mxu0 %vm4542_vm14, %v4926_v14  ;;  %vm4524_vm10 = vmpackc.low %vm2244_vm7, %vm2242_vm5  ;;  %2430 = vmatprep.mubr.f32.mxu1 %v4925_v1  ;;  %vm2322_vm7 = vcmp.eq.s32.totalorder %v6124_v60, %v5291_v19  ;;  %vm2606_vm14 = vcmp.eq.s32.totalorder %v6246_v63, %v5195_v5 }
 0x118   : > { %3955 = vmatmul.mubr.msk.f32.gmra.mrb[38].mxu0 %vm452_vm13, %v5504_v37  ;;  %vm4544_vm4 = vmpackc.low %vm2320_vm9, %vm2318_vm8  ;;  %vm2604_vm9 = vcmp.eq.s32.totalorder %v6246_v63, %v5186_v2 }
 0x119   : > { %4525 = vmatpush1.bf16.msk.msra.mxu1 %vm4524_vm10, %v4926_v14  ;;  %4545 = vmatpush1.bf16.msk.msra.mxu0 %vm4544_vm4, %v4926_v14  ;;  %vm4526_vm5 = vmpackc.low %vm2249_vm11, %vm2247_vm12  ;;  %vm2684_vm11 = vcmp.eq.s32.totalorder %v6258_v8, %v5186_v2  ;;  %vm2686_vm10 = vcmp.eq.s32.totalorder %v6258_v8, %v5195_v5  ;;  %vm2605_vm4 = vcmp.eq.s32.totalorder %v6270_v9, %v5195_v5 }
 0x11a   : > { %4527 = vmatprep.subr.msk.bf16.mxu1 %vm4526_vm5, %v4926_v14  ;;  %vm4546_vm8 = vmpackc.low %vm2325_vm0, %vm2323_vm15  ;;  %2519 = vmatprep.mubr.f32.mxu0 %v4925_v1  ;;  %vm2603_vm0 = vcmp.eq.s32.totalorder %v6270_v9, %v5186_v2 }
 0x11b   : > { %4547 = vmatprep.subr.msk.bf16.mxu0 %vm4546_vm8, %v4926_v14  ;;  %vm4528_vm12 = vmpackc.low %vm2248_vm1, %vm2246_vm2  ;;  %vm2683_vm2 = vcmp.eq.s32.totalorder %v6285_v10, %v5186_v2  ;;  %vm2685_vm1 = vcmp.eq.s32.totalorder %v6285_v10, %v5195_v5  ;;  %vm2610_vm8 = vcmp.eq.s32.totalorder %v6246_v63, %v5201_v7 }
 0x11c   : > { %vm4548_vm15 = vmpackc.low %vm2324_vm6, %vm2322_vm7  ;;  %vm2608_vm6 = vcmp.eq.s32.totalorder %v6246_v63, %v5198_v6 }
 0x11d   : > { %4529 = vmatpush1.bf16.msk.msra.mxu1 %vm4528_vm12, %v4926_v14  ;;  %4549 = vmatpush1.bf16.msk.msra.mxu0 %vm4548_vm15, %v4926_v14  ;;  %vm4550_vm5 = vmpackc.low %vm2606_vm14, %vm2604_vm9  ;;  %vm2688_vm9 = vcmp.eq.s32.totalorder %v6258_v8, %v5198_v6  ;;  %vm2690_vm14 = vcmp.eq.s32.totalorder %v6258_v8, %v5201_v7  ;;  %vm2609_vm15 = vcmp.eq.s32.totalorder %v6270_v9, %v5201_v7 }
 0x11e   : > { %4551 = vmatprep.subr.msk.bf16.mxu0 %vm4550_vm5, %v4926_v14  ;;  %vm4574_vm7 = vmpackc.low %vm2686_vm10, %vm2684_vm11  ;;  %vm2607_vm10 = vcmp.eq.s32.totalorder %v6270_v9, %v5198_v6  ;;  %vm2689_vm5 = vcmp.eq.s32.totalorder %v6285_v10, %v5201_v7 }
 0x11f   : > { %4575 = vmatprep.subr.msk.bf16.mxu1 %vm4574_vm7, %v4926_v14  ;;  %vm4552_vm12 = vmpackc.low %vm2605_vm4, %vm2603_vm0  ;;  %vm2687_vm4 = vcmp.eq.s32.totalorder %v6285_v10, %v5198_v6  ;;  %vm2614_vm7 = vcmp.eq.s32.totalorder %v6246_v63, %v5242_v16 }
 0x120   : > { %4051 = vmatmul.mubr.msk.f32.vlgmr.msra.gmra.mrb[40].mxu1 %vm452_vm13, %v6327_v11  ;;  %4075 = vmatmul.mubr.msk.f32.vlgmr.msra.gmra.mrb[40].mxu0 %vm554_vm3, %v6331_v12  ;;  %vm4576_vm11 = vmpackc.low %vm2685_vm1, %vm2683_vm2  ;;  %vm2612_vm1 = vcmp.eq.s32.totalorder %v6246_v63, %v5239_v15 }
 0x121   : > { %4553 = vmatpush1.bf16.msk.msra.mxu0 %vm4552_vm12, %v4926_v14  ;;  %4577 = vmatpush1.bf16.msk.msra.mxu1 %vm4576_vm11, %v4926_v14  ;;  %vm4554_vm0 = vmpackc.low %vm2610_vm8, %vm2608_vm6  ;;  %vm2692_vm8 = vcmp.eq.s32.totalorder %v6258_v8, %v5239_v15  ;;  %vm2694_vm12 = vcmp.eq.s32.totalorder %v6258_v8, %v5242_v16  ;;  %vm2613_vm11 = vcmp.eq.s32.totalorder %v6270_v9, %v5242_v16 }
 0x122   : > { %2436 = vmatprep.mubr.f32.mxu1 %v4925_v1  ;;  %2525 = vmatprep.mubr.f32.mxu0 %v4925_v1  ;;  %vm4578_vm2 = vmpackc.low %vm2690_vm14, %vm2688_vm9  ;;  %vm2611_vm14 = vcmp.eq.s32.totalorder %v6270_v9, %v5239_v15 }
 0x123   : > { %4555 = vmatprep.subr.msk.bf16.mxu0 %vm4554_vm0, %v4926_v14  ;;  %4579 = vmatprep.subr.msk.bf16.mxu1 %vm4578_vm2, %v4926_v14  ;;  %vm4556_vm6 = vmpackc.low %vm2609_vm15, %vm2607_vm10  ;;  %vm2691_vm15 = vcmp.eq.s32.totalorder %v6285_v10, %v5239_v15  ;;  %vm2693_vm0 = vcmp.eq.s32.totalorder %v6285_v10, %v5242_v16  ;;  %vm2618_vm2 = vcmp.eq.s32.totalorder %v6246_v63, %v5268_v18 }
 0x124   : > { %4052 = vmatmul.mubr.msk.f32.gmra.mrb[42].mxu1 %vm452_vm13, %v6366_v13  ;;  %4076 = vmatmul.mubr.msk.f32.gmra.mrb[42].mxu0 %vm554_vm3, %v6370_v21  ;;  %vm4580_vm9 = vmpackc.low %vm2689_vm5, %vm2687_vm4  ;;  %vm2616_vm5 = vcmp.eq.s32.totalorder %v6246_v63, %v5265_v17 }
 0x125   : > { %4557 = vmatpush1.bf16.msk.msra.mxu0 %vm4556_vm6, %v4926_v14  ;;  %4581 = vmatpush1.bf16.msk.msra.mxu1 %vm4580_vm9, %v4926_v14  ;;  %vm4558_vm10 = vmpackc.low %vm2614_vm7, %vm2612_vm1  ;;  %vm2696_vm7 = vcmp.eq.s32.totalorder %v6258_v8, %v5265_v17  ;;  %vm2698_vm6 = vcmp.eq.s32.totalorder %v6258_v8, %v5268_v18  ;;  %vm2617_vm9 = vcmp.eq.s32.totalorder %v6270_v9, %v5268_v18 }
 0x126   : > { %2442 = vmatprep.mubr.f32.mxu1 %v4925_v1  ;;  %2531 = vmatprep.mubr.f32.mxu0 %v4925_v1  ;;  %vm4582_vm4 = vmpackc.low %vm2694_vm12, %vm2692_vm8  ;;  %vm2615_vm12 = vcmp.eq.s32.totalorder %v6270_v9, %v5265_v17 }
 0x127   : > { %4559 = vmatprep.subr.msk.bf16.mxu0 %vm4558_vm10, %v4926_v14  ;;  %4583 = vmatprep.subr.msk.bf16.mxu1 %vm4582_vm4, %v4926_v14  ;;  %vm4560_vm1 = vmpackc.low %vm2613_vm11, %vm2611_vm14  ;;  %vm2695_vm11 = vcmp.eq.s32.totalorder %v6285_v10, %v5265_v17  ;;  %vm2697_vm10 = vcmp.eq.s32.totalorder %v6285_v10, %v5268_v18  ;;  %vm2622_vm4 = vcmp.eq.s32.totalorder %v6246_v63, %v5294_v20 }
 0x128   : > { %4053 = vmatmul.mubr.msk.f32.gmra.mrb[44].mxu1 %vm452_vm13, %v6414_v24  ;;  %4077 = vmatmul.mubr.msk.f32.gmra.mrb[44].mxu0 %vm554_vm3, %v6418_v25  ;;  %vm4584_vm8 = vmpackc.low %vm2693_vm0, %vm2691_vm15  ;;  %vm2620_vm0 = vcmp.eq.s32.totalorder %v6246_v63, %v5291_v19 }
 0x129   : > { %4561 = vmatpush1.bf16.msk.msra.mxu0 %vm4560_vm1, %v4926_v14  ;;  %4585 = vmatpush1.bf16.msk.msra.mxu1 %vm4584_vm8, %v4926_v14  ;;  %vm4562_vm14 = vmpackc.low %vm2618_vm2, %vm2616_vm5  ;;  %vm2700_vm2 = vcmp.eq.s32.totalorder %v6258_v8, %v5291_v19  ;;  %vm2702_vm1 = vcmp.eq.s32.totalorder %v6258_v8, %v5294_v20  ;;  %vm2621_vm8 = vcmp.eq.s32.totalorder %v6270_v9, %v5294_v20 }
 0x12a   : > { %2448 = vmatprep.mubr.f32.mxu1 %v4925_v1  ;;  %2537 = vmatprep.mubr.f32.mxu0 %v4925_v1  ;;  %vm4586_vm15 = vmpackc.low %vm2698_vm6, %vm2696_vm7  ;;  %vm2619_vm6 = vcmp.eq.s32.totalorder %v6270_v9, %v5291_v19 }
 0x12b   : > { %4563 = vmatprep.subr.msk.bf16.mxu0 %vm4562_vm14, %v4926_v14  ;;  %4587 = vmatprep.subr.msk.bf16.mxu1 %vm4586_vm15, %v4926_v14  ;;  %vm4564_vm5 = vmpackc.low %vm2617_vm9, %vm2615_vm12  ;;  %vm2699_vm9 = vcmp.eq.s32.totalorder %v6285_v10, %v5291_v19  ;;  %vm2701_vm14 = vcmp.eq.s32.totalorder %v6285_v10, %v5294_v20  ;;  %vm2626_vm15 = vcmp.eq.s32.totalorder %v6246_v63, %v5321_v23 }
 0x12c   : > { %4054 = vmatmul.mubr.msk.f32.gmra.mrb[46].mxu1 %vm452_vm13, %v6469_v28  ;;  %4078 = vmatmul.mubr.msk.f32.gmra.mrb[46].mxu0 %vm554_vm3, %v6473_v29  ;;  %vm4588_vm7 = vmpackc.low %vm2697_vm10, %vm2695_vm11  ;;  %vm2624_vm10 = vcmp.eq.s32.totalorder %v6246_v63, %v5318_v22 }
 0x12d   : > { %4565 = vmatpush1.bf16.msk.msra.mxu0 %vm4564_vm5, %v4926_v14  ;;  %4589 = vmatpush1.bf16.msk.msra.mxu1 %vm4588_vm7, %v4926_v14  ;;  %vm4566_vm12 = vmpackc.low %vm2622_vm4, %vm2620_vm0  ;;  %vm2981_vm4 = vcmp.eq.s32.totalorder %v6467_v27, %v5186_v2  ;;  %vm2983_vm5 = vcmp.eq.s32.totalorder %v6467_v27, %v5195_v5  ;;  %vm2625_vm7 = vcmp.eq.s32.totalorder %v6270_v9, %v5321_v23 }
 0x12e   : > { %4567 = vmatprep.subr.msk.bf16.mxu0 %vm4566_vm12, %v4926_v14  ;;  %vm4590_vm11 = vmpackc.low %vm2702_vm1, %vm2700_vm2  ;;  %2896 = vmatprep.mubr.f32.mxu1 %v4925_v1  ;;  %vm2623_vm1 = vcmp.eq.s32.totalorder %v6270_v9, %v5318_v22  ;;  %vm2982_vm12 = vcmp.eq.s32.totalorder %v6501_v31, %v5195_v5  ;;  %v687_v9 = vunpack.c.0.s8 %v686_v54 }
 0x12f   : > { %4591 = vmatprep.subr.msk.bf16.mxu1 %vm4590_vm11, %v4926_v14  ;;  %vm4568_vm0 = vmpackc.low %vm2621_vm8, %vm2619_vm6  ;;  %2807 = vmatprep.mubr.f32.mxu0 %v4925_v1  ;;  %vm2980_vm8 = vcmp.eq.s32.totalorder %v6501_v31, %v5186_v2  ;;  %vm2987_vm11 = vcmp.eq.s32.totalorder %v6467_v27, %v5201_v7 }
 0x130   : > { %vm4592_vm2 = vmpackc.low %vm2701_vm14, %vm2699_vm9  ;;  %vm2985_vm14 = vcmp.eq.s32.totalorder %v6467_v27, %v5198_v6 }
 0x131   : > { %4569 = vmatpush1.bf16.msk.msra.mxu0 %vm4568_vm0, %v4926_v14  ;;  %4593 = vmatpush1.bf16.msk.msra.mxu1 %vm4592_vm2, %v4926_v14  ;;  %vm4570_vm6 = vmpackc.low %vm2626_vm15, %vm2624_vm10  ;;  %vm3061_vm15 = vcmp.eq.s32.totalorder %v6525_v32, %v5186_v2  ;;  %vm3063_vm0 = vcmp.eq.s32.totalorder %v6525_v32, %v5195_v5 }
 0x132   : > { %4571 = vmatprep.subr.msk.bf16.mxu0 %vm4570_vm6, %v4926_v14  ;;  %vm4594_vm9 = vmpackc.low %vm2983_vm5, %vm2981_vm4  ;;  %vm2984_vm4 = vcmp.eq.s32.totalorder %v6501_v31, %v5198_v6  ;;  %vm2986_vm5 = vcmp.eq.s32.totalorder %v6501_v31, %v5201_v7  ;;  %vm3062_vm6 = vcmp.eq.s32.totalorder %v6538_v3, %v5195_v5 }
 0x133   : > { %4595 = vmatprep.subr.msk.bf16.mxu1 %vm4594_vm9, %v4926_v14  ;;  %vm4572_vm10 = vmpackc.low %vm2625_vm7, %vm2623_vm1  ;;  %vm3060_vm7 = vcmp.eq.s32.totalorder %v6538_v3, %v5186_v2  ;;  %vm2991_vm9 = vcmp.eq.s32.totalorder %v6467_v27, %v5242_v16 }
 0x134   : > { %4174 = vmatmul.mubr.msk.f32.vlgmr.msra.gmra.mrb[48].mxu1 %vm554_vm3, %v6331_v12  ;;  %vm4596_vm2 = vmpackc.low %vm2982_vm12, %vm2980_vm8  ;;  %vm2989_vm12 = vcmp.eq.s32.totalorder %v6467_v27, %v5239_v15 }
 0x135   : > { %4573 = vmatpush1.bf16.msk.msra.mxu0 %vm4572_vm10, %v4926_v14  ;;  %4597 = vmatpush1.bf16.msk.msra.mxu1 %vm4596_vm2, %v4926_v14  ;;  %vm4598_vm1 = vmpackc.low %vm2987_vm11, %vm2985_vm14  ;;  %vm3065_vm11 = vcmp.eq.s32.totalorder %v6525_v32, %v5198_v6  ;;  %vm3067_vm10 = vcmp.eq.s32.totalorder %v6525_v32, %v5201_v7  ;;  %vm2990_vm2 = vcmp.eq.s32.totalorder %v6501_v31, %v5242_v16 }
 0x136   : > { %4599 = vmatprep.subr.msk.bf16.mxu1 %vm4598_vm1, %v4926_v14  ;;  %vm4618_vm8 = vmpackc.low %vm3063_vm0, %vm3061_vm15  ;;  %2902 = vmatprep.mubr.f32.mxu1 %v4925_v1  ;;  %vm2988_vm0 = vcmp.eq.s32.totalorder %v6501_v31, %v5239_v15  ;;  %vm3066_vm1 = vcmp.eq.s32.totalorder %v6538_v3, %v5201_v7 }
 0x137   : > { %4619 = vmatprep.subr.msk.bf16.mxu0 %vm4618_vm8, %v4926_v14  ;;  %vm4600_vm14 = vmpackc.low %vm2986_vm5, %vm2984_vm4  ;;  %vm3064_vm5 = vcmp.eq.s32.totalorder %v6538_v3, %v5198_v6  ;;  %vm2995_vm8 = vcmp.eq.s32.totalorder %v6467_v27, %v5268_v18 }
 0x138   : > { %4150 = vmatmul.mubr.msk.f32.vlgmr.msra.gmra.mrb[48].mxu0 %vm452_vm13, %v6327_v11  ;;  %vm4620_vm15 = vmpackc.low %vm3062_vm6, %vm3060_vm7  ;;  %4175 = vmatmul.mubr.msk.f32.gmra.mrb[50].mxu1 %vm554_vm3, %v6370_v21  ;;  %vm2993_vm6 = vcmp.eq.s32.totalorder %v6467_v27, %v5265_v17 }
 0x139   : > { %4601 = vmatpush1.bf16.msk.msra.mxu1 %vm4600_vm14, %v4926_v14  ;;  %4621 = vmatpush1.bf16.msk.msra.mxu0 %vm4620_vm15, %v4926_v14  ;;  %vm4602_vm4 = vmpackc.low %vm2991_vm9, %vm2989_vm12  ;;  %vm3069_vm9 = vcmp.eq.s32.totalorder %v6525_v32, %v5239_v15  ;;  %vm3071_vm14 = vcmp.eq.s32.totalorder %v6525_v32, %v5242_v16  ;;  %vm2994_vm15 = vcmp.eq.s32.totalorder %v6501_v31, %v5268_v18 }
 0x13a   : > { %2813 = vmatprep.mubr.f32.mxu0 %v4925_v1  ;;  %4603 = vmatprep.subr.msk.bf16.mxu1 %vm4602_vm4, %v4926_v14  ;;  %vm4622_vm7 = vmpackc.low %vm3067_vm10, %vm3065_vm11  ;;  %vm2992_vm10 = vcmp.eq.s32.totalorder %v6501_v31, %v5265_v17  ;;  %vm3070_vm4 = vcmp.eq.s32.totalorder %v6538_v3, %v5242_v16 }
 0x13b   : > { %4623 = vmatprep.subr.msk.bf16.mxu0 %vm4622_vm7, %v4926_v14  ;;  %vm4604_vm12 = vmpackc.low %vm2990_vm2, %vm2988_vm0  ;;  %2908 = vmatprep.mubr.f32.mxu1 %v4925_v1  ;;  %vm3068_vm2 = vcmp.eq.s32.totalorder %v6538_v3, %v5239_v15  ;;  %vm2999_vm7 = vcmp.eq.s32.totalorder %v6467_v27, %v5294_v20 }
 0x13c   : > { %4151 = vmatmul.mubr.msk.f32.gmra.mrb[50].mxu0 %vm452_vm13, %v6366_v13  ;;  %vm4624_vm11 = vmpackc.low %vm3066_vm1, %vm3064_vm5  ;;  %4176 = vmatmul.mubr.msk.f32.gmra.mrb[52].mxu1 %vm554_vm3, %v6418_v25  ;;  %vm2997_vm1 = vcmp.eq.s32.totalorder %v6467_v27, %v5291_v19 }
 0x13d   : > { %4605 = vmatpush1.bf16.msk.msra.mxu1 %vm4604_vm12, %v4926_v14  ;;  %4625 = vmatpush1.bf16.msk.msra.mxu0 %vm4624_vm11, %v4926_v14  ;;  %vm4606_vm0 = vmpackc.low %vm2995_vm8, %vm2993_vm6  ;;  %vm3073_vm8 = vcmp.eq.s32.totalorder %v6525_v32, %v5265_v17  ;;  %vm3075_vm12 = vcmp.eq.s32.totalorder %v6525_v32, %v5268_v18  ;;  %vm2998_vm11 = vcmp.eq.s32.totalorder %v6501_v31, %v5294_v20 }
 0x13e   : > { %2819 = vmatprep.mubr.f32.mxu0 %v4925_v1  ;;  %4607 = vmatprep.subr.msk.bf16.mxu1 %vm4606_vm0, %v4926_v14  ;;  %vm4626_vm5 = vmpackc.low %vm3071_vm14, %vm3069_vm9  ;;  %vm2996_vm14 = vcmp.eq.s32.totalorder %v6501_v31, %v5291_v19  ;;  %vm3074_vm0 = vcmp.eq.s32.totalorder %v6538_v3, %v5268_v18 }
 0x13f   : > { %4627 = vmatprep.subr.msk.bf16.mxu0 %vm4626_vm5, %v4926_v14  ;;  %vm4608_vm6 = vmpackc.low %vm2994_vm15, %vm2992_vm10  ;;  %2914 = vmatprep.mubr.f32.mxu1 %v4925_v1  ;;  %vm3072_vm15 = vcmp.eq.s32.totalorder %v6538_v3, %v5265_v17  ;;  %vm3003_vm5 = vcmp.eq.s32.totalorder %v6467_v27, %v5321_v23 }
 0x140   : > { %4152 = vmatmul.mubr.msk.f32.gmra.mrb[52].mxu0 %vm452_vm13, %v6414_v24  ;;  %vm4628_vm9 = vmpackc.low %vm3070_vm4, %vm3068_vm2  ;;  %4177 = vmatmul.mubr.msk.f32.gmra.mrb[54].mxu1 %vm554_vm3, %v6473_v29  ;;  %vm3001_vm4 = vcmp.eq.s32.totalorder %v6467_v27, %v5318_v22 }
 0x141   : > { %4609 = vmatpush1.bf16.msk.msra.mxu1 %vm4608_vm6, %v4926_v14  ;;  %4629 = vmatpush1.bf16.msk.msra.mxu0 %vm4628_vm9, %v4926_v14  ;;  %vm4610_vm10 = vmpackc.low %vm2999_vm7, %vm2997_vm1  ;;  %vm3077_vm7 = vcmp.eq.s32.totalorder %v6525_v32, %v5291_v19  ;;  %vm3079_vm6 = vcmp.eq.s32.totalorder %v6525_v32, %v5294_v20  ;;  %vm3002_vm9 = vcmp.eq.s32.totalorder %v6501_v31, %v5321_v23 }
 0x142   : > { %2825 = vmatprep.mubr.f32.mxu0 %v4925_v1  ;;  %4611 = vmatprep.subr.msk.bf16.mxu1 %vm4610_vm10, %v4926_v14  ;;  %vm4630_vm2 = vmpackc.low %vm3075_vm12, %vm3073_vm8  ;;  %vm3000_vm12 = vcmp.eq.s32.totalorder %v6501_v31, %v5318_v22  ;;  %vm3078_vm10 = vcmp.eq.s32.totalorder %v6538_v3, %v5294_v20 }
 0x143   : > { %4631 = vmatprep.subr.msk.bf16.mxu0 %vm4630_vm2, %v4926_v14  ;;  %vm4612_vm1 = vmpackc.low %vm2998_vm11, %vm2996_vm14  ;;  %3184 = vmatprep.mubr.f32.mxu1 %v4925_v1  ;;  %vm3076_vm11 = vcmp.eq.s32.totalorder %v6538_v3, %v5291_v19 }
 0x144   : > { %4153 = vmatmul.mubr.msk.f32.gmra.mrb[54].mxu0 %vm452_vm13, %v6469_v28  ;;  %vm4632_vm8 = vmpackc.low %vm3074_vm0, %vm3072_vm15 }
 0x145   : > { %4613 = vmatpush1.bf16.msk.msra.mxu1 %vm4612_vm1, %v4926_v14  ;;  %4633 = vmatpush1.bf16.msk.msra.mxu0 %vm4632_vm8, %v4926_v14  ;;  %vm4614_vm14 = vmpackc.low %vm3003_vm5, %vm3001_vm4 }
 0x146   : > { %4615 = vmatprep.subr.msk.bf16.mxu1 %vm4614_vm14, %v4926_v14  ;;  %vm4634_vm15 = vmpackc.low %vm3079_vm6, %vm3077_vm7  ;;  %3273 = vmatprep.mubr.f32.mxu0 %v4925_v1 }
 0x147   : > { %4635 = vmatprep.subr.msk.bf16.mxu0 %vm4634_vm15, %v4926_v14  ;;  %vm4616_vm0 = vmpackc.low %vm3002_vm9, %vm3000_vm12 }
 0x148   : > { %vm4636_vm2 = vmpackc.low %vm3078_vm10, %vm3076_vm11 }
 0x149   : > { %4617 = vmatpush1.bf16.msk.msra.mxu1 %vm4616_vm0, %v4926_v14  ;;  %4637 = vmatpush1.bf16.msk.msra.mxu0 %vm4636_vm2, %v4926_v14 }
 0x14c   : > { %4249 = vmatmul.mubr.msk.f32.vlgmr.msra.gmra.mrb[56].mxu1 %vm452_vm13, %v6327_v11  ;;  %4273 = vmatmul.mubr.msk.f32.vlgmr.msra.gmra.mrb[56].mxu0 %vm554_vm3, %v6331_v12 }
 0x14d   : > { %3190 = vmatprep.mubr.f32.mxu1 %v4925_v1  ;;  %3279 = vmatprep.mubr.f32.mxu0 %v4925_v1 }
 0x150   : > { %4250 = vmatmul.mubr.msk.f32.gmra.mrb[58].mxu1 %vm452_vm13, %v6366_v13  ;;  %4274 = vmatmul.mubr.msk.f32.gmra.mrb[58].mxu0 %vm554_vm3, %v6370_v21 }
 0x151   : > { %3196 = vmatprep.mubr.f32.mxu1 %v4925_v1  ;;  %3285 = vmatprep.mubr.f32.mxu0 %v4925_v1 }
 0x154   : > { %4251 = vmatmul.mubr.msk.f32.gmra.mrb[60].mxu1 %vm452_vm13, %v6414_v24  ;;  %4275 = vmatmul.mubr.msk.f32.gmra.mrb[60].mxu0 %vm554_vm3, %v6418_v25 }
 0x155   : > { %3202 = vmatprep.mubr.f32.mxu1 %v4925_v1  ;;  %3291 = vmatprep.mubr.f32.mxu0 %v4925_v1 }
 0x158   : > { %4252 = vmatmul.mubr.msk.f32.gmra.mrb[62].mxu1 %vm452_vm13, %v6469_v28  ;;  %4276 = vmatmul.mubr.msk.f32.gmra.mrb[62].mxu0 %vm554_vm3, %v6473_v29  ;;  %v6691_v29 = vsub.s32 %v687_v9, %v5186_v2  ;;  %vm6695_vm3 = vcmp.lt.s32.totalorder %v289_v0, 256 }
 0x183   : > { %v633_v4 = vpop.f32.mrb[0].mxu1 }
 0x184   : > { %v635_v5 = vpop.f32.mrb[1].mxu1 }
 0x186   : > { %v531_v6 = vpop.f32.mrb[0].mxu0 }
 0x187   : > { %v656_v7 = vmul.f32 %v633_v4, %v531_v6  ;;  %v533_v14 = vpop.f32.mrb[1].mxu0  ;;  %v639_v15 = vpop.f32.mrb[2].mxu1 }
 0x188   : > { %v657_v16 = vmul.f32 %v635_v5, %v533_v14  ;;  %v641_v17 = vpop.f32.mrb[3].mxu1 }
 0x18a   : > { %v537_v18 = vpop.f32.mrb[2].mxu0 }
 0x18b   : > { %v658_v19 = vmul.f32 %v639_v15, %v537_v18  ;;  %v539_v20 = vpop.f32.mrb[3].mxu0  ;;  %v645_v22 = vpop.f32.mrb[4].mxu1 }
 0x18c   : > { %v659_v23 = vmul.f32 %v641_v17, %v539_v20  ;;  %v647_v1 = vpop.f32.mrb[5].mxu1 }
 0x18d   : > { %v664_v33 = vadd.f32 %v658_v19, %v656_v7 }
 0x18e   : > { %v673_v34 = vadd.f32 %v659_v23, %v657_v16  ;;  %v543_v35 = vpop.f32.mrb[4].mxu0 }
 0x18f   : > { %v660_v36 = vmul.f32 %v645_v22, %v543_v35  ;;  %v545_v37 = vpop.f32.mrb[5].mxu0  ;;  %v651_v38 = vpop.f32.mrb[6].mxu1 }
 0x190   : > { %v661_v39 = vmul.f32 %v647_v1, %v545_v37  ;;  %v653_v40 = vpop.f32.mrb[7].mxu1 }
 0x191   : > { %v665_v41 = vadd.f32 %v664_v33, %v660_v36 }
 0x192   : > { %v674_v42 = vadd.f32 %v673_v34, %v661_v39  ;;  %v549_v43 = vpop.f32.mrb[6].mxu0 }
 0x193   : > { %v662_v44 = vmul.f32 %v651_v38, %v549_v43  ;;  %v551_v45 = vpop.f32.mrb[7].mxu0 }
 0x194   : > { %v663_v46 = vmul.f32 %v653_v40, %v551_v45 }
 0x195   : > { %v666_v47 = vadd.f32 %v665_v41, %v662_v44 }
 0x196   : > { %v675_v48 = vadd.f32 %v674_v42, %v663_v46 }
 0x197   : > { %v667_v49 = vrot.slane %v666_v47, 4 }
 0x198   : > { %v676_v50 = vrot.slane %v675_v48, 4 }
 0x199   : > { %v668_v51 = vadd.f32 %v667_v49, %v666_v47 }
 0x19a   : > { %v677_v52 = vadd.f32 %v676_v50, %v675_v48 }
 0x19b   : > { %v669_v55 = vrot.slane %v668_v51, 2  ;;  %v924_v56 = vpop.f32.mrb[8].mxu1  ;;  %v1013_v57 = vpop.f32.mrb[8].mxu0 }
 0x19c   : > { %v678_v58 = vrot.slane %v677_v52, 2  ;;  %v1036_v59 = vmul.f32 %v1013_v57, %v924_v56  ;;  %v926_v60 = vpop.f32.mrb[9].mxu1  ;;  %v1015_v61 = vpop.f32.mrb[9].mxu0 }
 0x19d   : > { %v670_v62 = vadd.f32 %v669_v55, %v668_v51  ;;  %v1037_v63 = vmul.f32 %v1015_v61, %v926_v60 }
 0x19e   : > { %v679_v8 = vadd.f32 %v678_v58, %v677_v52 }
 0x19f   : > { %v671_v10 = vrot.slane %v670_v62, 1  ;;  %v930_v11 = vpop.f32.mrb[10].mxu1  ;;  %v1019_v12 = vpop.f32.mrb[10].mxu0 }
 0x1a0   : > { %v680_v13 = vrot.slane %v679_v8, 1  ;;  %v1038_v21 = vmul.f32 %v1019_v12, %v930_v11  ;;  %v932_v24 = vpop.f32.mrb[11].mxu1  ;;  %v1021_v25 = vpop.f32.mrb[11].mxu0 }
 0x1a1   : > { %v672_v26 = vadd.f32 %v671_v10, %v670_v62  ;;  %v1039_v27 = vmul.f32 %v1021_v25, %v932_v24 }
 0x1a2   : > { %v681_v28 = vadd.f32 %v680_v13, %v679_v8  ;;  %v1044_v30 = vadd.f32 %v1038_v21, %v1036_v59 }
 0x1a3   : > { %v1053_v31 = vadd.f32 %v1039_v27, %v1037_v63  ;;  %v936_v32 = vpop.f32.mrb[12].mxu1  ;;  %v1025_v3 = vpop.f32.mrb[12].mxu0 }
 0x1a4   : > { %v684_v4 = vcombine.low %v672_v26, %v681_v28  ;;  %v1040_v5 = vmul.f32 %v1025_v3, %v936_v32  ;;  %v938_v6 = vpop.f32.mrb[13].mxu1  ;;  %v1027_v7 = vpop.f32.mrb[13].mxu0 }
 0x1a5   : > { %v1041_v14 = vmul.f32 %v1027_v7, %v938_v6 }
 0x1a6   : > { %v691_v15 = vrot.slane %v684_v4, %v6691_v29  ;;  %v1045_v16 = vadd.f32 %v1044_v30, %v1040_v5 }
 0x1a7   : > { %v1054_v2 = vadd.f32 %v1053_v31, %v1041_v14  ;;  %v942_v18 = vpop.f32.mrb[14].mxu1  ;;  %v1031_v19 = vpop.f32.mrb[14].mxu0 }
 0x1a8   : > { %v698_v20 = vrot.slane %v691_v15, %v6691_v29  ;;  %v1042_v22 = vmul.f32 %v1031_v19, %v942_v18  ;;  %v944_v23 = vpop.f32.mrb[15].mxu1  ;;  %v1033_v1 = vpop.f32.mrb[15].mxu0 }
 0x1a9   : > { %v1043_v33 = vmul.f32 %v1033_v1, %v944_v23 }
 0x1aa   : > { %704 = vst.msk [vmem:[%s6701_s21] ss:$8 sm:$0x3] %vm6695_vm3, %v698_v20  ;;  %v1046_v34 = vadd.f32 %v1045_v16, %v1042_v22 }
 0x1ab   : > { %v1055_v0 = vadd.f32 %v1054_v2, %v1043_v33 }
 0x1ac   : > { %v1047_v35 = vrot.slane %v1046_v34, 4 }
 0x1ad   : > { %v1056_v36 = vrot.slane %v1055_v0, 4 }
 0x1ae   : > { %v1048_v37 = vadd.f32 %v1047_v35, %v1046_v34 }
 0x1af   : > { %v1057_v38 = vadd.f32 %v1056_v36, %v1055_v0  ;;  %v1390_v39 = vpop.f32.mrb[16].mxu1 }
 0x1b0   : > { %v1049_v40 = vrot.slane %v1048_v37, 2  ;;  %v1392_v41 = vpop.f32.mrb[17].mxu1 }
 0x1b1   : > { %v1058_v42 = vrot.slane %v1057_v38, 2 }
 0x1b2   : > { %v1050_v43 = vadd.f32 %v1049_v40, %v1048_v37 }
 0x1b3   : > { %v1059_v44 = vadd.f32 %v1058_v42, %v1057_v38  ;;  %v1301_v45 = vpop.f32.mrb[16].mxu0  ;;  %v1396_v46 = vpop.f32.mrb[18].mxu1 }
 0x1b4   : > { %v1051_v47 = vrot.slane %v1050_v43, 1  ;;  %v1413_v48 = vmul.f32 %v1390_v39, %v1301_v45  ;;  %v1303_v49 = vpop.f32.mrb[17].mxu0  ;;  %v1398_v50 = vpop.f32.mrb[19].mxu1 }
 0x1b5   : > { %v1060_v51 = vrot.slane %v1059_v44, 1  ;;  %v1414_v52 = vmul.f32 %v1392_v41, %v1303_v49 }
 0x1b6   : > { %v1052_v53 = vadd.f32 %v1051_v47, %v1050_v43 }
 0x1b7   : > { %v1061_v54 = vadd.f32 %v1060_v51, %v1059_v44  ;;  %v1307_v55 = vpop.f32.mrb[18].mxu0  ;;  %v1402_v56 = vpop.f32.mrb[20].mxu1 }
 0x1b8   : > { %v1415_v57 = vmul.f32 %v1396_v46, %v1307_v55  ;;  %v1309_v58 = vpop.f32.mrb[19].mxu0  ;;  %v1404_v59 = vpop.f32.mrb[21].mxu1 }
 0x1b9   : > { %v1064_v60 = vcombine.low %v1052_v53, %v1061_v54  ;;  %v1416_v61 = vmul.f32 %v1398_v50, %v1309_v58 }
 0x1ba   : > { %v1421_v62 = vadd.f32 %v1415_v57, %v1413_v48 }
 0x1bb   : > { %v1071_v63 = vrot.slane %v1064_v60, %v6691_v29  ;;  %v1430_v8 = vadd.f32 %v1416_v61, %v1414_v52  ;;  %v1313_v9 = vpop.f32.mrb[20].mxu0  ;;  %v1408_v10 = vpop.f32.mrb[22].mxu1 }
 0x1bc   : > { %v1417_v11 = vmul.f32 %v1402_v56, %v1313_v9  ;;  %v1315_v12 = vpop.f32.mrb[21].mxu0  ;;  %v1410_v13 = vpop.f32.mrb[23].mxu1 }
 0x1bd   : > { %v1078_v21 = vrot.slane %v1071_v63, %v6691_v29  ;;  %v1418_v24 = vmul.f32 %v1404_v59, %v1315_v12 }
 0x1be   : > { %v1422_v25 = vadd.f32 %v1421_v62, %v1417_v11 }
 0x1bf   : > { %3683 = vst.msk [vmem:[%s6701_s21 + $0x1] ss:$8 sm:$0x3] %vm6695_vm3, %v1078_v21  ;;  %v1431_v26 = vadd.f32 %v1430_v8, %v1418_v24  ;;  %v1319_v27 = vpop.f32.mrb[22].mxu0 }
 0x1c0   : > { %v1419_v28 = vmul.f32 %v1408_v10, %v1319_v27  ;;  %v1321_v30 = vpop.f32.mrb[23].mxu0 }
 0x1c1   : > { %v1420_v31 = vmul.f32 %v1410_v13, %v1321_v30 }
 0x1c2   : > { %v1423_v32 = vadd.f32 %v1422_v25, %v1419_v28 }
 0x1c3   : > { %v1432_v3 = vadd.f32 %v1431_v26, %v1420_v31 }
 0x1c4   : > { %v1424_v4 = vrot.slane %v1423_v32, 4 }
 0x1c5   : > { %v1433_v5 = vrot.slane %v1432_v3, 4 }
 0x1c6   : > { %v1425_v6 = vadd.f32 %v1424_v4, %v1423_v32 }
 0x1c7   : > { %v1434_v7 = vadd.f32 %v1433_v5, %v1432_v3  ;;  %v1678_v14 = vpop.f32.mrb[24].mxu1  ;;  %v1767_v15 = vpop.f32.mrb[24].mxu0 }
 0x1c8   : > { %v1426_v16 = vrot.slane %v1425_v6, 2  ;;  %v1790_v2 = vmul.f32 %v1767_v15, %v1678_v14  ;;  %v1680_v18 = vpop.f32.mrb[25].mxu1  ;;  %v1769_v19 = vpop.f32.mrb[25].mxu0 }
 0x1c9   : > { %v1435_v20 = vrot.slane %v1434_v7, 2  ;;  %v1791_v22 = vmul.f32 %v1769_v19, %v1680_v18 }
 0x1ca   : > { %v1427_v23 = vadd.f32 %v1426_v16, %v1425_v6 }
 0x1cb   : > { %v1436_v1 = vadd.f32 %v1435_v20, %v1434_v7  ;;  %v1684_v33 = vpop.f32.mrb[26].mxu1  ;;  %v1773_v34 = vpop.f32.mrb[26].mxu0 }
 0x1cc   : > { %v1428_v0 = vrot.slane %v1427_v23, 1  ;;  %v1792_v35 = vmul.f32 %v1773_v34, %v1684_v33  ;;  %v1686_v36 = vpop.f32.mrb[27].mxu1  ;;  %v1775_v37 = vpop.f32.mrb[27].mxu0 }
 0x1cd   : > { %v1437_v38 = vrot.slane %v1436_v1, 1  ;;  %v1793_v39 = vmul.f32 %v1775_v37, %v1686_v36 }
 0x1ce   : > { %v1429_v40 = vadd.f32 %v1428_v0, %v1427_v23  ;;  %v1798_v41 = vadd.f32 %v1792_v35, %v1790_v2 }
 0x1cf   : > { %v1438_v42 = vadd.f32 %v1437_v38, %v1436_v1  ;;  %v1807_v43 = vadd.f32 %v1793_v39, %v1791_v22  ;;  %v1690_v44 = vpop.f32.mrb[28].mxu1  ;;  %v1779_v45 = vpop.f32.mrb[28].mxu0 }
 0x1d0   : > { %v1794_v46 = vmul.f32 %v1779_v45, %v1690_v44  ;;  %v1692_v47 = vpop.f32.mrb[29].mxu1  ;;  %v1781_v48 = vpop.f32.mrb[29].mxu0 }
 0x1d1   : > { %v1441_v49 = vcombine.low %v1429_v40, %v1438_v42  ;;  %v1795_v50 = vmul.f32 %v1781_v48, %v1692_v47 }
 0x1d2   : > { %v1799_v51 = vadd.f32 %v1798_v41, %v1794_v46 }
 0x1d3   : > { %v1448_v52 = vrot.slane %v1441_v49, %v6691_v29  ;;  %v1808_v53 = vadd.f32 %v1807_v43, %v1795_v50  ;;  %v1696_v54 = vpop.f32.mrb[30].mxu1  ;;  %v1785_v55 = vpop.f32.mrb[30].mxu0 }
 0x1d4   : > { %v1796_v56 = vmul.f32 %v1785_v55, %v1696_v54  ;;  %v1698_v57 = vpop.f32.mrb[31].mxu1  ;;  %v1787_v58 = vpop.f32.mrb[31].mxu0 }
 0x1d5   : > { %v1455_v59 = vrot.slane %v1448_v52, %v6691_v29  ;;  %v1797_v60 = vmul.f32 %v1787_v58, %v1698_v57 }
 0x1d6   : > { %v1800_v61 = vadd.f32 %v1799_v51, %v1796_v56 }
 0x1d7   : > { %3782 = vst.msk [vmem:[%s6701_s21 + $0x2] ss:$8 sm:$0x3] %vm6695_vm3, %v1455_v59  ;;  %v1809_v62 = vadd.f32 %v1808_v53, %v1797_v60 }
 0x1d8   : > { %v1801_v63 = vrot.slane %v1800_v61, 4 }
 0x1d9   : > { %v1810_v8 = vrot.slane %v1809_v62, 4 }
 0x1da   : > { %v1802_v9 = vadd.f32 %v1801_v63, %v1800_v61 }
 0x1db   : > { %v1811_v10 = vadd.f32 %v1810_v8, %v1809_v62  ;;  %v2144_v11 = vpop.f32.mrb[32].mxu1 }
 0x1dc   : > { %v1803_v12 = vrot.slane %v1802_v9, 2  ;;  %v2146_v13 = vpop.f32.mrb[33].mxu1 }
 0x1dd   : > { %v1812_v21 = vrot.slane %v1811_v10, 2 }
 0x1de   : > { %v1804_v24 = vadd.f32 %v1803_v12, %v1802_v9 }
 0x1df   : > { %v1813_v25 = vadd.f32 %v1812_v21, %v1811_v10  ;;  %v2055_v26 = vpop.f32.mrb[32].mxu0  ;;  %v2150_v27 = vpop.f32.mrb[34].mxu1 }
 0x1e0   : > { %v1805_v28 = vrot.slane %v1804_v24, 1  ;;  %v2167_v30 = vmul.f32 %v2144_v11, %v2055_v26  ;;  %v2057_v31 = vpop.f32.mrb[33].mxu0  ;;  %v2152_v32 = vpop.f32.mrb[35].mxu1 }
 0x1e1   : > { %v1814_v3 = vrot.slane %v1813_v25, 1  ;;  %v2168_v4 = vmul.f32 %v2146_v13, %v2057_v31 }
 0x1e2   : > { %v1806_v5 = vadd.f32 %v1805_v28, %v1804_v24 }
 0x1e3   : > { %v1815_v6 = vadd.f32 %v1814_v3, %v1813_v25  ;;  %v2061_v7 = vpop.f32.mrb[34].mxu0  ;;  %v2156_v14 = vpop.f32.mrb[36].mxu1 }
 0x1e4   : > { %v2169_v15 = vmul.f32 %v2150_v27, %v2061_v7  ;;  %v2063_v16 = vpop.f32.mrb[35].mxu0  ;;  %v2158_v2 = vpop.f32.mrb[37].mxu1 }
 0x1e5   : > { %v1818_v18 = vcombine.low %v1806_v5, %v1815_v6  ;;  %v2170_v19 = vmul.f32 %v2152_v32, %v2063_v16 }
 0x1e6   : > { %v2175_v20 = vadd.f32 %v2169_v15, %v2167_v30 }
 0x1e7   : > { %v1825_v22 = vrot.slane %v1818_v18, %v6691_v29  ;;  %v2184_v23 = vadd.f32 %v2170_v19, %v2168_v4  ;;  %v2067_v1 = vpop.f32.mrb[36].mxu0  ;;  %v2162_v33 = vpop.f32.mrb[38].mxu1 }
 0x1e8   : > { %v2171_v34 = vmul.f32 %v2156_v14, %v2067_v1  ;;  %v2069_v0 = vpop.f32.mrb[37].mxu0  ;;  %v2164_v35 = vpop.f32.mrb[39].mxu1 }
 0x1e9   : > { %v1832_v36 = vrot.slane %v1825_v22, %v6691_v29  ;;  %v2172_v37 = vmul.f32 %v2158_v2, %v2069_v0 }
 0x1ea   : > { %v2176_v38 = vadd.f32 %v2175_v20, %v2171_v34 }
 0x1eb   : > { %3881 = vst.msk [vmem:[%s6701_s21 + $0x3] ss:$8 sm:$0x3] %vm6695_vm3, %v1832_v36  ;;  %v2185_v39 = vadd.f32 %v2184_v23, %v2172_v37  ;;  %v2073_v40 = vpop.f32.mrb[38].mxu0 }
 0x1ec   : > { %v2173_v41 = vmul.f32 %v2162_v33, %v2073_v40  ;;  %v2075_v42 = vpop.f32.mrb[39].mxu0 }
 0x1ed   : > { %v2174_v43 = vmul.f32 %v2164_v35, %v2075_v42 }
 0x1ee   : > { %v2177_v44 = vadd.f32 %v2176_v38, %v2173_v41 }
 0x1ef   : > { %v2186_v45 = vadd.f32 %v2185_v39, %v2174_v43 }
 0x1f0   : > { %v2178_v46 = vrot.slane %v2177_v44, 4 }
 0x1f1   : > { %v2187_v47 = vrot.slane %v2186_v45, 4 }
 0x1f2   : > { %v2179_v48 = vadd.f32 %v2178_v46, %v2177_v44 }
 0x1f3   : > { %v2188_v49 = vadd.f32 %v2187_v47, %v2186_v45  ;;  %v2432_v50 = vpop.f32.mrb[40].mxu1  ;;  %v2521_v51 = vpop.f32.mrb[40].mxu0 }
 0x1f4   : > { %v2180_v52 = vrot.slane %v2179_v48, 2  ;;  %v2544_v53 = vmul.f32 %v2521_v51, %v2432_v50  ;;  %v2434_v54 = vpop.f32.mrb[41].mxu1  ;;  %v2523_v55 = vpop.f32.mrb[41].mxu0 }
 0x1f5   : > { %v2189_v56 = vrot.slane %v2188_v49, 2  ;;  %v2545_v57 = vmul.f32 %v2523_v55, %v2434_v54 }
 0x1f6   : > { %v2181_v58 = vadd.f32 %v2180_v52, %v2179_v48 }
 0x1f7   : > { %v2190_v59 = vadd.f32 %v2189_v56, %v2188_v49  ;;  %v2438_v60 = vpop.f32.mrb[42].mxu1  ;;  %v2527_v61 = vpop.f32.mrb[42].mxu0 }
 0x1f8   : > { %v2182_v62 = vrot.slane %v2181_v58, 1  ;;  %v2546_v63 = vmul.f32 %v2527_v61, %v2438_v60  ;;  %v2440_v8 = vpop.f32.mrb[43].mxu1  ;;  %v2529_v9 = vpop.f32.mrb[43].mxu0 }
 0x1f9   : > { %v2191_v10 = vrot.slane %v2190_v59, 1  ;;  %v2547_v11 = vmul.f32 %v2529_v9, %v2440_v8 }
 0x1fa   : > { %v2183_v12 = vadd.f32 %v2182_v62, %v2181_v58  ;;  %v2552_v13 = vadd.f32 %v2546_v63, %v2544_v53 }
 0x1fb   : > { %v2192_v21 = vadd.f32 %v2191_v10, %v2190_v59  ;;  %v2561_v24 = vadd.f32 %v2547_v11, %v2545_v57  ;;  %v2444_v25 = vpop.f32.mrb[44].mxu1  ;;  %v2533_v26 = vpop.f32.mrb[44].mxu0 }
 0x1fc   : > { %v2548_v27 = vmul.f32 %v2533_v26, %v2444_v25  ;;  %v2446_v28 = vpop.f32.mrb[45].mxu1  ;;  %v2535_v30 = vpop.f32.mrb[45].mxu0 }
 0x1fd   : > { %v2195_v31 = vcombine.low %v2183_v12, %v2192_v21  ;;  %v2549_v32 = vmul.f32 %v2535_v30, %v2446_v28 }
 0x1fe   : > { %v2553_v3 = vadd.f32 %v2552_v13, %v2548_v27 }
 0x1ff   : > { %v2202_v4 = vrot.slane %v2195_v31, %v6691_v29  ;;  %v2562_v5 = vadd.f32 %v2561_v24, %v2549_v32  ;;  %v2450_v6 = vpop.f32.mrb[46].mxu1  ;;  %v2539_v7 = vpop.f32.mrb[46].mxu0 }
 0x200   : > { %v2550_v14 = vmul.f32 %v2539_v7, %v2450_v6  ;;  %v2452_v15 = vpop.f32.mrb[47].mxu1  ;;  %v2541_v16 = vpop.f32.mrb[47].mxu0 }
 0x201   : > { %v2209_v2 = vrot.slane %v2202_v4, %v6691_v29  ;;  %v2551_v18 = vmul.f32 %v2541_v16, %v2452_v15 }
 0x202   : > { %v2554_v19 = vadd.f32 %v2553_v3, %v2550_v14 }
 0x203   : > { %3980 = vst.msk [vmem:[%s6701_s21 + $0x4] ss:$8 sm:$0x3] %vm6695_vm3, %v2209_v2  ;;  %v2563_v20 = vadd.f32 %v2562_v5, %v2551_v18 }
 0x204   : > { %v2555_v22 = vrot.slane %v2554_v19, 4 }
 0x205   : > { %v2564_v23 = vrot.slane %v2563_v20, 4 }
 0x206   : > { %v2556_v1 = vadd.f32 %v2555_v22, %v2554_v19 }
 0x207   : > { %v2565_v33 = vadd.f32 %v2564_v23, %v2563_v20  ;;  %v2898_v34 = vpop.f32.mrb[48].mxu1 }
 0x208   : > { %v2557_v0 = vrot.slane %v2556_v1, 2  ;;  %v2900_v35 = vpop.f32.mrb[49].mxu1 }
 0x209   : > { %v2566_v36 = vrot.slane %v2565_v33, 2 }
 0x20a   : > { %v2558_v37 = vadd.f32 %v2557_v0, %v2556_v1 }
 0x20b   : > { %v2567_v38 = vadd.f32 %v2566_v36, %v2565_v33  ;;  %v2809_v39 = vpop.f32.mrb[48].mxu0  ;;  %v2904_v40 = vpop.f32.mrb[50].mxu1 }
 0x20c   : > { %v2559_v41 = vrot.slane %v2558_v37, 1  ;;  %v2921_v42 = vmul.f32 %v2898_v34, %v2809_v39  ;;  %v2811_v43 = vpop.f32.mrb[49].mxu0  ;;  %v2906_v44 = vpop.f32.mrb[51].mxu1 }
 0x20d   : > { %v2568_v45 = vrot.slane %v2567_v38, 1  ;;  %v2922_v46 = vmul.f32 %v2900_v35, %v2811_v43 }
 0x20e   : > { %v2560_v47 = vadd.f32 %v2559_v41, %v2558_v37 }
 0x20f   : > { %v2569_v48 = vadd.f32 %v2568_v45, %v2567_v38  ;;  %v2815_v49 = vpop.f32.mrb[50].mxu0  ;;  %v2910_v50 = vpop.f32.mrb[52].mxu1 }
 0x210   : > { %v2923_v51 = vmul.f32 %v2904_v40, %v2815_v49  ;;  %v2817_v52 = vpop.f32.mrb[51].mxu0  ;;  %v2912_v53 = vpop.f32.mrb[53].mxu1 }
 0x211   : > { %v2572_v54 = vcombine.low %v2560_v47, %v2569_v48  ;;  %v2924_v55 = vmul.f32 %v2906_v44, %v2817_v52 }
 0x212   : > { %v2929_v56 = vadd.f32 %v2923_v51, %v2921_v42 }
 0x213   : > { %v2579_v57 = vrot.slane %v2572_v54, %v6691_v29  ;;  %v2938_v58 = vadd.f32 %v2924_v55, %v2922_v46  ;;  %v2821_v59 = vpop.f32.mrb[52].mxu0  ;;  %v2916_v60 = vpop.f32.mrb[54].mxu1 }
 0x214   : > { %v2925_v61 = vmul.f32 %v2910_v50, %v2821_v59  ;;  %v2823_v62 = vpop.f32.mrb[53].mxu0  ;;  %v2918_v63 = vpop.f32.mrb[55].mxu1 }
 0x215   : > { %v2586_v8 = vrot.slane %v2579_v57, %v6691_v29  ;;  %v2926_v9 = vmul.f32 %v2912_v53, %v2823_v62 }
 0x216   : > { %v2930_v10 = vadd.f32 %v2929_v56, %v2925_v61 }
 0x217   : > { %4079 = vst.msk [vmem:[%s6701_s21 + $0x5] ss:$8 sm:$0x3] %vm6695_vm3, %v2586_v8  ;;  %v2939_v11 = vadd.f32 %v2938_v58, %v2926_v9  ;;  %v2827_v12 = vpop.f32.mrb[54].mxu0 }
 0x218   : > { %v2927_v13 = vmul.f32 %v2916_v60, %v2827_v12  ;;  %v2829_v21 = vpop.f32.mrb[55].mxu0 }
 0x219   : > { %v2928_v24 = vmul.f32 %v2918_v63, %v2829_v21 }
 0x21a   : > { %v2931_v25 = vadd.f32 %v2930_v10, %v2927_v13 }
 0x21b   : > { %v2940_v26 = vadd.f32 %v2939_v11, %v2928_v24 }
 0x21c   : > { %v2932_v27 = vrot.slane %v2931_v25, 4 }
 0x21d   : > { %v2941_v28 = vrot.slane %v2940_v26, 4 }
 0x21e   : > { %v2933_v30 = vadd.f32 %v2932_v27, %v2931_v25 }
 0x21f   : > { %v2942_v31 = vadd.f32 %v2941_v28, %v2940_v26  ;;  %v3186_v32 = vpop.f32.mrb[56].mxu1  ;;  %v3275_v3 = vpop.f32.mrb[56].mxu0 }
 0x220   : > { %v2934_v4 = vrot.slane %v2933_v30, 2  ;;  %v3298_v5 = vmul.f32 %v3275_v3, %v3186_v32  ;;  %v3188_v6 = vpop.f32.mrb[57].mxu1  ;;  %v3277_v7 = vpop.f32.mrb[57].mxu0 }
 0x221   : > { %v2943_v14 = vrot.slane %v2942_v31, 2  ;;  %v3299_v15 = vmul.f32 %v3277_v7, %v3188_v6 }
 0x222   : > { %v2935_v16 = vadd.f32 %v2934_v4, %v2933_v30 }
 0x223   : > { %v2944_v2 = vadd.f32 %v2943_v14, %v2942_v31  ;;  %v3192_v18 = vpop.f32.mrb[58].mxu1  ;;  %v3281_v19 = vpop.f32.mrb[58].mxu0 }
 0x224   : > { %v2936_v20 = vrot.slane %v2935_v16, 1  ;;  %v3300_v22 = vmul.f32 %v3281_v19, %v3192_v18  ;;  %v3194_v23 = vpop.f32.mrb[59].mxu1  ;;  %v3283_v1 = vpop.f32.mrb[59].mxu0 }
 0x225   : > { %v2945_v33 = vrot.slane %v2944_v2, 1  ;;  %v3301_v34 = vmul.f32 %v3283_v1, %v3194_v23 }
 0x226   : > { %v2937_v0 = vadd.f32 %v2936_v20, %v2935_v16  ;;  %v3306_v35 = vadd.f32 %v3300_v22, %v3298_v5 }
 0x227   : > { %v2946_v36 = vadd.f32 %v2945_v33, %v2944_v2  ;;  %v3315_v37 = vadd.f32 %v3301_v34, %v3299_v15  ;;  %v3198_v38 = vpop.f32.mrb[60].mxu1  ;;  %v3287_v39 = vpop.f32.mrb[60].mxu0 }
 0x228   : > { %v3302_v40 = vmul.f32 %v3287_v39, %v3198_v38  ;;  %v3200_v41 = vpop.f32.mrb[61].mxu1  ;;  %v3289_v42 = vpop.f32.mrb[61].mxu0 }
 0x229   : > { %v2949_v43 = vcombine.low %v2937_v0, %v2946_v36  ;;  %v3303_v44 = vmul.f32 %v3289_v42, %v3200_v41 }
 0x22a   : > { %v3307_v45 = vadd.f32 %v3306_v35, %v3302_v40 }
 0x22b   : > { %v2956_v46 = vrot.slane %v2949_v43, %v6691_v29  ;;  %v3316_v47 = vadd.f32 %v3315_v37, %v3303_v44  ;;  %v3204_v48 = vpop.f32.mrb[62].mxu1  ;;  %v3293_v49 = vpop.f32.mrb[62].mxu0 }
 0x22c   : > { %v3304_v50 = vmul.f32 %v3293_v49, %v3204_v48  ;;  %v3206_v51 = vpop.f32.mrb[63].mxu1  ;;  %v3295_v52 = vpop.f32.mrb[63].mxu0 }
 0x22d   : > { %v2963_v53 = vrot.slane %v2956_v46, %v6691_v29  ;;  %v3305_v54 = vmul.f32 %v3295_v52, %v3206_v51 }
 0x22e   : > { %v3308_v55 = vadd.f32 %v3307_v45, %v3304_v50 }
 0x22f   : > { %4178 = vst.msk [vmem:[%s6701_s21 + $0x6] ss:$8 sm:$0x3] %vm6695_vm3, %v2963_v53  ;;  %v3317_v56 = vadd.f32 %v3316_v47, %v3305_v54 }
 0x230   : > { %v3309_v57 = vrot.slane %v3308_v55, 4 }
 0x231   : > { %v3318_v58 = vrot.slane %v3317_v56, 4 }
 0x232   : > { %v3310_v59 = vadd.f32 %v3309_v57, %v3308_v55 }
 0x233   : > { %v3319_v60 = vadd.f32 %v3318_v58, %v3317_v56 }
 0x234   : > { %v3311_v61 = vrot.slane %v3310_v59, 2 }
 0x235   : > { %v3320_v62 = vrot.slane %v3319_v60, 2 }
 0x236   : > { %v3312_v63 = vadd.f32 %v3311_v61, %v3310_v59 }
 0x237   : > { %v3321_v8 = vadd.f32 %v3320_v62, %v3319_v60 }
 0x238   : > { %v3313_v9 = vrot.slane %v3312_v63, 1 }
 0x239   : > { %v3322_v10 = vrot.slane %v3321_v8, 1 }
 0x23a   : > { %v3314_v11 = vadd.f32 %v3313_v9, %v3312_v63 }
 0x23b   : > { %v3323_v12 = vadd.f32 %v3322_v10, %v3321_v8 }
 0x23d   : > { %v3326_v13 = vcombine.low %v3314_v11, %v3323_v12 }
 0x23f   : > { %v3333_v21 = vrot.slane %v3326_v13, %v6691_v29 }
 0x241   : > { %v3340_v24 = vrot.slane %v3333_v21, %v6691_v29 }
 0x243   : > { %4277 = vst.msk [vmem:[%s6701_s21 + $0x7] ss:$8 sm:$0x3] %vm6695_vm3, %v3340_v24 }
 0x244   : > { %4852 = shalt.err (!%p4849_p7)
}
 0x245   : > { %s4853_s8 = scalar_lea.hbm %s6743_s25, 256  ;;  %s4857_s29 = scalar_lea.hbm %s6794_s4, 512 }
 0x246   : > { %p4854_p1 = scmp.ne.s32.totalorder %s6743_s25, %s4853_s8  ;;  %p4858_p0 = scmp.lt.u32.totalorder %s6743_s25, %s6794_s4 }
 0x247   : > { %p4859_p9 = scmp.lt.u32.totalorder %s4857_s29, %s4853_s8  ;;  %p4861_p2 = scmp.lt.u32.totalorder %s4853_s8, %s6743_s25 }
 0x248   : > { %p4855_p8 = pnand %p4854_p1, %p6816_p13 }
 0x249   : > { %p4860_p12 = por %p4859_p9, %p4858_p0 }
 0x24a   : > { %p4856_p11 = pneg %p4855_p8 }
 0x24b   : > { %p4862_p6 = por %p4861_p2, %p4860_p12 }
 0x24d   : > { %p4863_p10 = pnand %p4862_p6, %p4856_p11 }
 0x24f   : > { %4866 = shalt.err (!%p4863_p10)
}
 0x250   : > { %4650 = dma.vmem_to_hbm [thread:$0]  (%p6816_p13), %s6745_s24, 256, %s6743_s25, %s3346_s2  }
 0x251 PF: > { %s3372_s5 = sand.u32 1, %s4905_s15   ;;  %p6817_p4 = scmp.ne.s32.totalorder %s6801_s22, 0 }
 0x252   : > { %p6818_p5 = scmp.ge.s32.totalorder %s4917_s18, 2  ;;  %s3373_s7 = scalar_lea.sflag [#allocation4], %s3372_s5 }
 0x254   : > { %p4667_p3 = pnand %p6818_p5, %p6817_p4 }
 0x256   : > { %4900 = dma.done.wait (!%p4667_p3), %s3373_s7, 256  }
 0x257   : > { %4902 = vsyncadd (!%p4667_p3), %s3373_s7, 4294967040  ;;  %p21_p7 = scmp.ge.s32.totalorder %s5064_s9, 4   ;;  %s6819_s15 = smov %s4909_s16 }
 0x258   : > { %s6820_s16 = smov %s4913_s17  ;;  %s6821_s17 = smov %s5080_s14 }
 0x259   : > { %s6822_s18 = smov %s5064_s9  ;;  %23 = sbr.rel (!%p21_p7) target bundleno = 10 (0xa), region = 123 }
 0x260   :  { %3378 = vsyncpa [#allocation3], 1 }
 0x261   :  { %3380 = vsyncpa [#allocation3 + $0x1], 1 }
 0x262   :  { %3381 = vsyncpa [#allocation6], 1 }
 0x263   :  { %3383 = vsyncpa [#allocation6 + $0x1], 1 }
 0x264   :  { %3384 = vsyncpa [#allocation9], 1 }
 0x265   :  { %3385 = vsyncpa [#allocation4], 1 }
 0x266   :  { %3387 = vsyncpa [#allocation4 + $0x1], 1 }

</bundles_post_ra>
